<compile_context>
chip_gen: v7x
topology: tpu7x:2x2x1
jax: 0.10.0
libtpu: 0.0.40
codegen_flags: <defaults>
</compile_context>

<pallas_src>
import functools

import jax
import jax.numpy as jnp
from jax.experimental import pallas as pl
from jax.experimental.pallas import tpu as pltpu


_SMALL_A_BYTES = 2 * 1024 * 1024   # below ~2 MiB of A, a fused XLA matmul wins


def _round_up(a, b):
    return ((a + b - 1) // b) * b


def _vmem_capacity_bytes():
    """Physical VMEM of the current TPU generation (fallback: v7x's 64 MiB)."""
    try:
        cap = int(pltpu.get_tpu_info().vmem_capacity_bytes)
        if cap > 0:
            return cap
    except Exception:
        pass
    return 64 * 1024 * 1024


def _num_tensorcores():
    """Best-effort TensorCores-per-device query (megacore gating). Fallback 1."""
    try:
        dev = jax.devices()[0]
        for attr in ("num_cores", "core_count", "num_tensorcores"):
            v = getattr(dev, attr, None)
            if isinstance(v, int) and v > 0:
                return v
    except Exception:
        pass
    return 1


def _choose_tiles(n, k_pad, d_pad, itemsize, budget, row_align, n_cores,
                  may_mask):
    """Pick (tm, tk).

    tk is pushed toward the full 128-padded reduction dim (x resident, no
    accumulation); tm is the largest row count whose double-buffered A tile +
    x tile + resident f32 output fits the per-generation VMEM budget.
    """
    tm_cap = _round_up(n, row_align)
    if n_cores >= 2 and n > row_align:
        # >=2 i-steps so dimension_semantics=("parallel",...) can shard the
        # A stream across both TensorCores.
        tm_cap = min(tm_cap, _round_up((n + 1) // 2, row_align))

    # A: double-buffered (+1 copy if the K-tail select materializes a masked
    # copy); out: resident f32 tile + f32 dot temp; x counted separately.
    a_copies = 3 if may_mask else 2
    out_copies = 3

    def max_tm(tk_):
        fixed = 2 * tk_ * d_pad * itemsize               # double-buffered x
        per_row = a_copies * tk_ * itemsize + out_copies * d_pad * 4
        if budget <= fixed:
            return 0
        return (budget - fixed) // per_row

    tk = k_pad
    tm = min(tm_cap, int(max_tm(tk)))
    # Shrink the reduction tile only until a reasonably large tm fits.
    while tm < min(tm_cap, 256) and tk > 512:
        tk = max(512, _round_up(tk // 2, 128))
        tm = min(tm_cap, int(max_tm(tk)))

    if tm >= 256:
        tm = (tm // 256) * 256            # MXU-friendly (2x256x256 on v6e/v7x)
    tm = max(row_align, (tm // row_align) * row_align)
    tm = min(tm, tm_cap)
    return int(tm), int(tk)


def _self_expr_kernel(a_ref, x_ref, o_ref, *, valid_k, tk, mask_k_tail,
                      multi_k):
    """One (tm, D_pad) output tile of affinity_mat @ x.

    The output block index is constant across the k (reduction) axis, so
    o_ref stays resident in VMEM and is accumulated into directly.
    """
    a = a_ref[...]
    if mask_k_tail:
        # Zero the out-of-range K-tail columns of the A tile.  Must be a
        # select: out-of-bounds block contents are unspecified, and NaN/Inf
        # there would survive a multiply-by-zero.
        col = jax.lax.broadcasted_iota(jnp.int32, (1, a.shape[1]), 1)
        if multi_k:
            col = col + pl.program_id(1) * tk
        a = jnp.where(col < valid_k, a, jnp.zeros((), dtype=a.dtype))

    contrib = jnp.dot(a, x_ref[...], preferred_element_type=jnp.float32)

    if multi_k:
        @pl.when(pl.program_id(1) == 0)
        def _():
            o_ref[...] = jnp.zeros_like(o_ref)
        o_ref[...] += contrib
    else:
        o_ref[...] = contrib


def self_expressive_forward(affinity_mat, x, *, tm=None, tk=None,
                            force_pallas=False):
    """latent_recon = affinity_mat @ x  (A streamed from HBM exactly once)."""
    N, K = affinity_mat.shape
    K2, D = x.shape
    if K != K2:
        raise ValueError("affinity_mat and x num_samples mismatch")

    a = affinity_mat                       # never copied / cast / padded
    if x.dtype != a.dtype:
        x = x.astype(a.dtype)              # x is tiny; uniform MXU input dtype
    itemsize = jnp.dtype(a.dtype).itemsize

    # Tiny A: pallas_call fixed overhead dominates, XLA's matmul is optimal.
    if not force_pallas and N * K * itemsize <= _SMALL_A_BYTES:
        return jnp.dot(a, x, preferred_element_type=jnp.float32)

    D_pad = _round_up(D, 128)              # lane-dense output stores
    K_pad = _round_up(K, 128)
    row_align = 8 * max(1, 4 // itemsize)  # f32: 8, bf16: 16, int8/fp8: 32

    cap = _vmem_capacity_bytes()
    tile_budget = cap // 2                 # 64 MiB on v5e/v6e, 32 MiB on v7x
    vmem_limit = max(32 * 1024 * 1024, (3 * cap) // 4)

    may_mask = (K % 128) != 0
    tm_auto, tk_auto = _choose_tiles(N, K_pad, D_pad, itemsize, tile_budget,
                                     row_align, _num_tensorcores(), may_mask)
    if tm is None:
        tm = tm_auto
    else:
        tm = max(row_align,
                 _round_up(min(tm, _round_up(N, row_align)), row_align))
    if tk is None:
        tk = tk_auto
    else:
        tk = max(128, _round_up(min(tk, K_pad), 128))

    gi = -(-N // tm)
    gk = -(-K // tk)
    K_full = gk * tk                       # grid coverage of the reduction dim
    multi_k = gk > 1
    mask_k_tail = (K % tk) != 0

    # Only x (K x D, tiny next to the N x N affinity stream) gets zero-padded,
    # so every x row the kernel touches is a real zero (K-padding is exact).
    if (K_full, D_pad) != (K, D):
        x = jnp.pad(x, ((0, K_full - K), (0, D_pad - D)))

    kernel = functools.partial(_self_expr_kernel, valid_k=K, tk=tk,
                               mask_k_tail=mask_k_tail, multi_k=multi_k)

    x_reads = gi if multi_k else 1         # constant block index -> x fetched once
    cost = pl.CostEstimate(
        flops=2 * N * K * D,
        transcendentals=0,
        bytes_accessed=(itemsize * N * K
                        + itemsize * K_full * D_pad * x_reads
                        + 4 * N * D_pad),
    )

    out = pl.pallas_call(
        kernel,
        out_shape=jax.ShapeDtypeStruct((N, D_pad), jnp.float32),
        grid_spec=pltpu.PrefetchScalarGridSpec(
            num_scalar_prefetch=0,
            grid=(gi, gk),
            in_specs=[
                # Each (tm, tk) block of A is read from HBM exactly once.
                pl.BlockSpec((tm, tk), lambda i, k: (i, k)),
                # x spans the full (padded) feature dim; resident when gk == 1.
                pl.BlockSpec((tk, D_pad), lambda i, k: (k, 0)),
            ],
            # Output tile resident in VMEM across the k (reduction) axis.
            out_specs=pl.BlockSpec((tm, D_pad), lambda i, k: (i, 0)),
        ),
        compiler_params=pltpu.CompilerParams(
            dimension_semantics=("parallel", "arbitrary"),
            vmem_limit_bytes=vmem_limit,
        ),
        cost_estimate=cost,
    )(a, x)

    return out if D_pad == D else out[:, :D]


class SelfExpressiveLayerPallas:
    """JAX/Pallas port of SelfExpressiveLayer (forward only).

    `param_dtype=jnp.bfloat16` stores the affinity matrix persistently in bf16
    (halving the dominant HBM stream) while the kernel still accumulates in
    f32; default f32 keeps exact PyTorch semantics.
    # TODO(synk): parameter gradients / training of affinity_mat are handled by
    # the surrounding JAX training loop, not inside this kernel.
    """

    def __init__(self, num_samples, init_affinity=None,
                 param_dtype=jnp.float32):
        if init_affinity is not None:
            self.affinity_mat = jnp.asarray(init_affinity, dtype=param_dtype)
        else:
            # nn.init.constant_(self.affinity_mat, 1.0)
            self.affinity_mat = jnp.ones((num_samples, num_samples),
                                         dtype=param_dtype)

    def __call__(self, x, **kwargs):
        return self_expressive_forward(self.affinity_mat, x, **kwargs)


if __name__ == "__main__":
    root = jax.random.PRNGKey(0)
    k0, k1, k2 = jax.random.split(root, 3)

    # ---- main check: layer-sized problem through the Pallas path ----------
    num_samples, feat_dim = 512, 128
    x = jax.random.normal(k0, (num_samples, feat_dim), dtype=jnp.float32)
    layer = SelfExpressiveLayerPallas(num_samples)
    out = jax.block_until_ready(layer(x, force_pallas=True))
    ref = jnp.matmul(layer.affinity_mat, x)
    assert out.shape == (num_samples, feat_dim)
    assert jnp.allclose(out, ref, atol=1e-3, rtol=1e-3), "mismatch vs reference"

    # ---- odd shapes + forced small tiles: multi-k accumulation, K-tail mask,
    # ---- partial boundary blocks, feature-dim padding -----------------------
    a2 = jax.random.normal(k1, (300, 300), dtype=jnp.float32) * 0.01
    x2 = jax.random.normal(k2, (300, 96), dtype=jnp.float32)
    out2 = jax.block_until_ready(
        self_expressive_forward(a2, x2, tm=128, tk=128, force_pallas=True))
    ref2 = jnp.matmul(a2, x2)
    assert out2.shape == (300, 96)
    assert jnp.allclose(out2, ref2, atol=1e-3, rtol=1e-3), "mismatch (multi-k)"

    # ---- odd shapes with auto tiles: single-k resident-x path + tail mask --
    out3 = jax.block_until_ready(
        self_expressive_forward(a2, x2, force_pallas=True))
    assert out3.shape == (300, 96)
    assert jnp.allclose(out3, ref2, atol=1e-3, rtol=1e-3), "mismatch (auto tiles)"

    print("KERNEL_OK")
</pallas_src>

<mosaic_0001>
module attributes {stable_mosaic.version = 11 : i64} {
  func.func @_self_expr_kernel(%arg0: i32, %arg1: i32, %arg2: memref<512x512xf32, #tpu.memory_space<vmem>>, %arg3: memref<512x128xf32, #tpu.memory_space<vmem>>, %arg4: memref<512x128xf32, #tpu.memory_space<vmem>>) attributes {dimension_semantics = [#tpu.dimension_semantics<parallel>, #tpu.dimension_semantics<arbitrary>], iteration_bounds = array<i64: 1, 1>, scalar_prefetch = 0 : i64, scratch_operands = 0 : i64, tpu.core_type = #tpu.core_type<tc>, window_params = [{transform_indices = @transform_0, window_bounds = array<i64: 512, 512>}, {transform_indices = @transform_1, window_bounds = array<i64: 512, 128>}, {transform_indices = @transform_2, window_bounds = array<i64: 512, 128>}]} {
    %c0 = arith.constant 0 : index
    %c0_0 = arith.constant 0 : index
    %0 = vector.load %arg2[%c0, %c0_0] : memref<512x512xf32, #tpu.memory_space<vmem>>, vector<512x512xf32>
    %c0_1 = arith.constant 0 : index
    %c0_2 = arith.constant 0 : index
    %1 = vector.load %arg3[%c0_1, %c0_2] : memref<512x128xf32, #tpu.memory_space<vmem>>, vector<512x128xf32>
    %cst = arith.constant dense<0.000000e+00> : vector<512x128xf32>
    %2 = tpu.matmul %0, %1, %cst {dimension_numbers = #tpu.dot_dimension_numbers<[1], [0], [0], [1], [0, 0, 1, 1], [], []>} : vector<512x512xf32>, vector<512x128xf32>, vector<512x128xf32> -> vector<512x128xf32>
    %c0_3 = arith.constant 0 : index
    %c0_4 = arith.constant 0 : index
    %3 = vector.load %arg4[%c0_3, %c0_4] : memref<512x128xf32, #tpu.memory_space<vmem>>, vector<512x128xf32>
    tpu.vector_store %arg4[%c0_3, %c0_4], %2 {strides = array<i32>} : memref<512x128xf32, #tpu.memory_space<vmem>>, vector<512x128xf32>,
    return
  }
  func.func @transform_0(%arg0: i32, %arg1: i32) -> (i32, i32) {
    %c0_i32 = arith.constant 0 : i32
    return %arg0, %arg1 : i32, i32
  }
  func.func @transform_1(%arg0: i32, %arg1: i32) -> (i32, i32) {
    %c0_i32 = arith.constant 0 : i32
    %c0_i32_0 = arith.constant 0 : i32
    return %arg1, %c0_i32 : i32, i32
  }
  func.func @transform_2(%arg0: i32, %arg1: i32) -> (i32, i32) {
    %c0_i32 = arith.constant 0 : i32
    %c0_i32_0 = arith.constant 0 : i32
    return %arg0, %c0_i32 : i32, i32
  }
}

</mosaic_0001>

<bundles_post_ra>
// kernel: tpu_custom_call.1
= control target key start
LH: loop header
LB: loop body
LE: loop exit
PB: predicated region body
PF: predicated region fallthrough
CT: control target
= control target key end

     0   :  { %7 = vsyncpa [#allocation3], 0  ;;  %s1549_s0 = inlined_call_operand.hbm [shape: f32[512,512], index: 0, kind: input, shape index: {}]   ;;  %s1550_s1 = inlined_call_operand.hbm [shape: f32[512,128], index: 1, kind: input, shape index: {}]   ;;  %s1551_s2 = inlined_call_operand.hbm [shape: f32[512,128], index: 2, kind: output, shape index: {}]  }
   0x1   :  { %8 = vsyncpa [#allocation6], 0 }
   0x2   :  { %9 = vsyncpa [#allocation4], 0  ;;  %s1452_s9 = smov [#allocation2]   ;;  %s1380_s13 = scalar_lea.hbm %s1549_s0, 32768 }
   0x3   :  { %s15_s10 = sshll.u32 %s1452_s9, 4  ;;  %p1381_p0 = scmp.ne.s32.totalorder %s1549_s0, %s1380_s13  ;;  %s16_s10 = int_to_ptr.vmem [resolvable:$true] %s15_s10 }
   0x4   :  { %p1384_p1 = scmp.lt.u32.totalorder %s1380_s13, %s1549_s0 }
   0x6   :  { %p1386_p2 = pnand %p1384_p1, %p1381_p0 }
   0x8   :  { %1389 = shalt.err (!%p1386_p2)
}
   0x9   :  { %s1390_s18 = scalar_lea.vmem %s16_s10, 32768  ;;  %p1395_p4 = scmp.lt.s32.totalorder %s16_s10, %s16_s10 }
   0xa   :  { %p1391_p3 = scmp.ne.s32.totalorder %s16_s10, %s1390_s18  ;;  %p1396_p5 = scmp.lt.s32.totalorder %s1390_s18, %s1390_s18 }
   0xc   :  { %p1397_p6 = por %p1396_p5, %p1395_p4 }
   0xe   :  { %p1398_p7 = pnand %p1397_p6, %p1391_p3 }
  0x10   :  { %1401 = shalt.err (!%p1398_p7)
}
  0x11   :  { %s1453_s19 = smov 512   ;;  %s1454_s20 = smov 32  }
  0x12   :  { %21 = dma.hbm_to_vmem [thread:$0]  %s1549_s0, 32768, %s16_s10, [#allocation3], %s1453_s19, %s1453_s19, %s1454_s20  }
  0x13   :  { %s1455_s23 = smov [#allocation5]   ;;  %s1402_s27 = scalar_lea.hbm %s1550_s1, 8192 }
  0x14   :  { %s27_s24 = sshll.u32 %s1455_s23, 4  ;;  %p1403_p8 = scmp.ne.s32.totalorder %s1550_s1, %s1402_s27  ;;  %s28_s24 = int_to_ptr.vmem [resolvable:$true] %s27_s24 }
  0x15   :  { %p1406_p9 = scmp.lt.u32.totalorder %s1402_s27, %s1550_s1 }
  0x17   :  { %p1408_p10 = pnand %p1406_p9, %p1403_p8 }
  0x19   :  { %1411 = shalt.err (!%p1408_p10)
}
  0x1a   :  { %s1412_s4 = scalar_lea.vmem %s28_s24, 8192  ;;  %p1417_p12 = scmp.lt.s32.totalorder %s28_s24, %s28_s24 }
  0x1b   :  { %p1413_p11 = scmp.ne.s32.totalorder %s28_s24, %s1412_s4  ;;  %p1418_p13 = scmp.lt.s32.totalorder %s1412_s4, %s1412_s4 }
  0x1d   :  { %p1419_p0 = por %p1418_p13, %p1417_p12 }
  0x1f   :  { %p1420_p1 = pnand %p1419_p0, %p1413_p11 }
  0x21   :  { %1423 = shalt.err (!%p1420_p1)
}
  0x22   :  { %s1456_s0 = smov 128   ;;  %s1457_s5 = smov 8  }
  0x23   :  { %33 = dma.hbm_to_vmem [thread:$0]  %s1550_s1, 8192, %s28_s24, [#allocation6], %s1456_s0, %s1456_s0, %s1457_s5  }
  0x24   :  { %1446 = dma.done.wait [#allocation3], 32768  }
  0x25   :  { %1447 = vsyncadd [#allocation3], 4294934528 }
  0x26   :  { %1448 = dma.done.wait [#allocation6], 8192  }
  0x27   :  { %1449 = vsyncadd [#allocation6], 4294959104  ;;  %v1458_v0 = vmov 0.0|0.0   ;;  %v296_v1 = vld [vmem:[#allocation5] sm:$0xff]  ;;  %v297_v2 = vld [vmem:[#allocation5 + $0x8] sm:$0xff]  ;;  %s1459_s1 = smov [#allocation7]  }
  0x28   :  { %1212 = vmatprep.subr.bf16.mxu1 %v1458_v0  ;;  %1260 = vmatprep.subr.bf16.mxu0 %v1458_v0  ;;  %v328_v3 = vld [vmem:[#allocation5 + $0x100] sm:$0xff]  ;;  %v1213_v4 = vpack.c.bf16 %v297_v2, %v296_v1  ;;  %v329_v5 = vld [vmem:[#allocation5 + $0x108] sm:$0xff]  ;;  %v298_v6 = vld [vmem:[#allocation5 + $0x10] sm:$0xff]  ;;  %s1199_s8 = sshll.u32 %s1459_s1, 4  ;;  %s1200_s8 = int_to_ptr.vmem [resolvable:$true] %s1199_s8 }
  0x29   :  { %v299_v7 = vld [vmem:[#allocation5 + $0x18] sm:$0xff]  ;;  %v1261_v8 = vpack.c.bf16 %v329_v5, %v328_v3  ;;  %v330_v9 = vld [vmem:[#allocation5 + $0x110] sm:$0xff]  ;;  %v300_v13 = vld [vmem:[#allocation5 + $0x20] sm:$0xff]  ;;  %s1424_s9 = scalar_lea.vmem %s1200_s8, 8192  ;;  %p1429_p3 = scmp.lt.s32.totalorder %s1200_s8, %s1200_s8 }
  0x2a   :  { %v331_v10 = vld [vmem:[#allocation5 + $0x118] sm:$0xff]  ;;  %1214 = vmatpush1.bf16.msra.mxu1 %v1213_v4  ;;  %v1216_v11 = vpack.c.bf16 %v299_v7, %v298_v6  ;;  %v301_v14 = vld [vmem:[#allocation5 + $0x28] sm:$0xff]  ;;  %v332_v15 = vld [vmem:[#allocation5 + $0x120] sm:$0xff]  ;;  %p1425_p2 = scmp.ne.s32.totalorder %s1200_s8, %s1424_s9  ;;  %p1430_p4 = scmp.lt.s32.totalorder %s1424_s9, %s1424_s9 }
  0x2b   :  { %1262 = vmatpush1.bf16.msra.mxu0 %v1261_v8  ;;  %1215 = vmatprep.subr.bf16.mxu1 %v1458_v0  ;;  %v1264_v12 = vpack.c.bf16 %v331_v10, %v330_v9  ;;  %v333_v16 = vld [vmem:[#allocation5 + $0x128] sm:$0xff]  ;;  %v1219_v17 = vpack.c.bf16 %v301_v14, %v300_v13  ;;  %v302_v19 = vld [vmem:[#allocation5 + $0x30] sm:$0xff]  ;;  %v303_v20 = vld [vmem:[#allocation5 + $0x38] sm:$0xff] }
  0x2c   :  { %1263 = vmatprep.subr.bf16.mxu0 %v1458_v0  ;;  %v1267_v18 = vpack.c.bf16 %v333_v16, %v332_v15  ;;  %v334_v21 = vld [vmem:[#allocation5 + $0x130] sm:$0xff]  ;;  %v335_v22 = vld [vmem:[#allocation5 + $0x138] sm:$0xff]  ;;  %v1222_v23 = vpack.c.bf16 %v303_v20, %v302_v19  ;;  %v304_v25 = vld [vmem:[#allocation5 + $0x40] sm:$0xff]  ;;  %p1431_p5 = por %p1430_p4, %p1429_p3 }
  0x2d   :  { %v1270_v24 = vpack.c.bf16 %v335_v22, %v334_v21  ;;  %v305_v26 = vld [vmem:[#allocation5 + $0x48] sm:$0xff]  ;;  %v336_v27 = vld [vmem:[#allocation5 + $0x140] sm:$0xff]  ;;  %v306_v31 = vld [vmem:[#allocation5 + $0x50] sm:$0xff] }
  0x2e   :  { %1217 = vmatpush1.bf16.msra.mxu1 %v1216_v11  ;;  %v337_v28 = vld [vmem:[#allocation5 + $0x148] sm:$0xff]  ;;  %v1225_v29 = vpack.c.bf16 %v305_v26, %v304_v25  ;;  %v307_v32 = vld [vmem:[#allocation5 + $0x58] sm:$0xff]  ;;  %v338_v33 = vld [vmem:[#allocation5 + $0x150] sm:$0xff]  ;;  %p1432_p6 = pnand %p1431_p5, %p1425_p2 }
  0x2f   :  { %1265 = vmatpush1.bf16.msra.mxu0 %v1264_v12  ;;  %1218 = vmatprep.subr.bf16.mxu1 %v1458_v0  ;;  %v1273_v30 = vpack.c.bf16 %v337_v28, %v336_v27  ;;  %v339_v34 = vld [vmem:[#allocation5 + $0x158] sm:$0xff]  ;;  %v1228_v35 = vpack.c.bf16 %v307_v32, %v306_v31  ;;  %v308_v37 = vld [vmem:[#allocation5 + $0x60] sm:$0xff]  ;;  %v309_v38 = vld [vmem:[#allocation5 + $0x68] sm:$0xff] }
  0x30   :  { %1266 = vmatprep.subr.bf16.mxu0 %v1458_v0  ;;  %v1276_v36 = vpack.c.bf16 %v339_v34, %v338_v33  ;;  %v340_v39 = vld [vmem:[#allocation5 + $0x160] sm:$0xff]  ;;  %v341_v40 = vld [vmem:[#allocation5 + $0x168] sm:$0xff]  ;;  %v43_v42 = vld [vmem:[#allocation2 + $0x18] sm:$0xff]  ;;  %v1231_v43 = vpack.c.bf16 %v309_v38, %v308_v37 }
  0x31   :  { %v41_v41 = vld [vmem:[#allocation2 + $0x8] sm:$0xff]  ;;  %809 = vmatprep.mubr.f32.mxu0 %v43_v42  ;;  %v1279_v44 = vpack.c.bf16 %v341_v40, %v340_v39  ;;  %v310_v45 = vld [vmem:[#allocation5 + $0x70] sm:$0xff]  ;;  %v311_v46 = vld [vmem:[#allocation5 + $0x78] sm:$0xff] }
  0x32   :  { %1220 = vmatpush1.bf16.msra.mxu1 %v1219_v17  ;;  %424 = vmatprep.mubr.f32.mxu1 %v41_v41  ;;  %v342_v47 = vld [vmem:[#allocation5 + $0x170] sm:$0xff]  ;;  %v343_v48 = vld [vmem:[#allocation5 + $0x178] sm:$0xff]  ;;  %v1234_v49 = vpack.c.bf16 %v311_v46, %v310_v45  ;;  %v312_v51 = vld [vmem:[#allocation5 + $0x80] sm:$0xff] }
  0x33   :  { %1268 = vmatpush1.bf16.msra.mxu0 %v1267_v18  ;;  %1221 = vmatprep.subr.bf16.mxu1 %v1458_v0  ;;  %v1282_v50 = vpack.c.bf16 %v343_v48, %v342_v47  ;;  %v313_v52 = vld [vmem:[#allocation5 + $0x88] sm:$0xff]  ;;  %v344_v53 = vld [vmem:[#allocation5 + $0x180] sm:$0xff]  ;;  %v314_v57 = vld [vmem:[#allocation5 + $0x90] sm:$0xff] }
  0x34   :  { %1269 = vmatprep.subr.bf16.mxu0 %v1458_v0  ;;  %v345_v54 = vld [vmem:[#allocation5 + $0x188] sm:$0xff]  ;;  %v1237_v55 = vpack.c.bf16 %v313_v52, %v312_v51  ;;  %v315_v58 = vld [vmem:[#allocation5 + $0x98] sm:$0xff]  ;;  %v346_v59 = vld [vmem:[#allocation5 + $0x190] sm:$0xff] }
  0x35   :  { %v1285_v56 = vpack.c.bf16 %v345_v54, %v344_v53  ;;  %v347_v60 = vld [vmem:[#allocation5 + $0x198] sm:$0xff]  ;;  %v1240_v61 = vpack.c.bf16 %v315_v58, %v314_v57  ;;  %v316_v63 = vld [vmem:[#allocation5 + $0xa0] sm:$0xff]  ;;  %v317_v1 = vld [vmem:[#allocation5 + $0xa8] sm:$0xff] }
  0x36   :  { %1223 = vmatpush1.bf16.msra.mxu1 %v1222_v23  ;;  %v1288_v62 = vpack.c.bf16 %v347_v60, %v346_v59  ;;  %v348_v2 = vld [vmem:[#allocation5 + $0x1a0] sm:$0xff]  ;;  %v349_v3 = vld [vmem:[#allocation5 + $0x1a8] sm:$0xff]  ;;  %v1243_v4 = vpack.c.bf16 %v317_v1, %v316_v63  ;;  %v318_v6 = vld [vmem:[#allocation5 + $0xb0] sm:$0xff] }
  0x37   :  { %1271 = vmatpush1.bf16.msra.mxu0 %v1270_v24  ;;  %1224 = vmatprep.subr.bf16.mxu1 %v1458_v0  ;;  %v1291_v5 = vpack.c.bf16 %v349_v3, %v348_v2  ;;  %v319_v7 = vld [vmem:[#allocation5 + $0xb8] sm:$0xff]  ;;  %v350_v8 = vld [vmem:[#allocation5 + $0x1b0] sm:$0xff]  ;;  %v320_v12 = vld [vmem:[#allocation5 + $0xc0] sm:$0xff] }
  0x38   :  { %1272 = vmatprep.subr.bf16.mxu0 %v1458_v0  ;;  %v351_v9 = vld [vmem:[#allocation5 + $0x1b8] sm:$0xff]  ;;  %v1246_v10 = vpack.c.bf16 %v319_v7, %v318_v6  ;;  %v321_v13 = vld [vmem:[#allocation5 + $0xc8] sm:$0xff]  ;;  %v352_v14 = vld [vmem:[#allocation5 + $0x1c0] sm:$0xff] }
  0x39   :  { %v1294_v11 = vpack.c.bf16 %v351_v9, %v350_v8  ;;  %v353_v15 = vld [vmem:[#allocation5 + $0x1c8] sm:$0xff]  ;;  %v1249_v16 = vpack.c.bf16 %v321_v13, %v320_v12  ;;  %v322_v18 = vld [vmem:[#allocation5 + $0xd0] sm:$0xff]  ;;  %v323_v19 = vld [vmem:[#allocation5 + $0xd8] sm:$0xff] }
  0x3a   :  { %1226 = vmatpush1.bf16.msra.mxu1 %v1225_v29  ;;  %v1297_v17 = vpack.c.bf16 %v353_v15, %v352_v14  ;;  %v354_v20 = vld [vmem:[#allocation5 + $0x1d0] sm:$0xff]  ;;  %v355_v21 = vld [vmem:[#allocation5 + $0x1d8] sm:$0xff]  ;;  %v1252_v22 = vpack.c.bf16 %v323_v19, %v322_v18  ;;  %v324_v24 = vld [vmem:[#allocation5 + $0xe0] sm:$0xff] }
  0x3b   :  { %1274 = vmatpush1.bf16.msra.mxu0 %v1273_v30  ;;  %1227 = vmatprep.subr.bf16.mxu1 %v1458_v0  ;;  %v1300_v23 = vpack.c.bf16 %v355_v21, %v354_v20  ;;  %v325_v25 = vld [vmem:[#allocation5 + $0xe8] sm:$0xff]  ;;  %v356_v26 = vld [vmem:[#allocation5 + $0x1e0] sm:$0xff]  ;;  %v326_v30 = vld [vmem:[#allocation5 + $0xf0] sm:$0xff] }
  0x3c   :  { %1275 = vmatprep.subr.bf16.mxu0 %v1458_v0  ;;  %v357_v27 = vld [vmem:[#allocation5 + $0x1e8] sm:$0xff]  ;;  %v1255_v28 = vpack.c.bf16 %v325_v25, %v324_v24  ;;  %v327_v31 = vld [vmem:[#allocation5 + $0xf8] sm:$0xff]  ;;  %v358_v32 = vld [vmem:[#allocation5 + $0x1f0] sm:$0xff] }
  0x3d   :  { %v1303_v29 = vpack.c.bf16 %v357_v27, %v356_v26  ;;  %v359_v33 = vld [vmem:[#allocation5 + $0x1f8] sm:$0xff]  ;;  %v1258_v34 = vpack.c.bf16 %v327_v31, %v326_v30  ;;  %v42_v37 = vld [vmem:[#allocation2 + $0x10] sm:$0xff]  ;;  %v45_v38 = vld [vmem:[#allocation2 + $0x28] sm:$0xff] }
  0x3e   :  { %1229 = vmatpush1.bf16.msra.mxu1 %v1228_v35  ;;  %v1306_v35 = vpack.c.bf16 %v359_v33, %v358_v32  ;;  %v47_v39 = vld [vmem:[#allocation2 + $0x38] sm:$0xff]  ;;  %v44_v40 = vld [vmem:[#allocation2 + $0x20] sm:$0xff]  ;;  %v46_v41 = vld [vmem:[#allocation2 + $0x30] sm:$0xff] }
  0x3f   :  { %1277 = vmatpush1.bf16.msra.mxu0 %v1276_v36  ;;  %1230 = vmatprep.subr.bf16.mxu1 %v1458_v0  ;;  %v40_v36 = vld [vmem:[#allocation2] sm:$0xff]  ;;  %v49_v42 = vld [vmem:[#allocation2 + $0x48] sm:$0xff]  ;;  %v55_v46 = vld [vmem:[#allocation2 + $0x78] sm:$0xff] }
  0x40   :  { %1278 = vmatprep.subr.bf16.mxu0 %v1458_v0  ;;  %v53_v45 = vld [vmem:[#allocation2 + $0x68] sm:$0xff]  ;;  %v52_v47 = vld [vmem:[#allocation2 + $0x60] sm:$0xff]  ;;  %v54_v48 = vld [vmem:[#allocation2 + $0x70] sm:$0xff] }
  0x41   :  { %v56_v51 = vld [vmem:[#allocation2 + $0x80] sm:$0xff]  ;;  %v58_v52 = vld [vmem:[#allocation2 + $0x90] sm:$0xff]  ;;  %v61_v53 = vld [vmem:[#allocation2 + $0xa8] sm:$0xff] }
  0x42   :  { %1232 = vmatpush1.bf16.msra.mxu1 %v1231_v43  ;;  %v51_v43 = vld [vmem:[#allocation2 + $0x58] sm:$0xff]  ;;  %v65_v57 = vld [vmem:[#allocation2 + $0xc8] sm:$0xff]  ;;  %v64_v59 = vld [vmem:[#allocation2 + $0xc0] sm:$0xff] }
  0x43   :  { %1280 = vmatpush1.bf16.msra.mxu0 %v1279_v44  ;;  %1233 = vmatprep.subr.bf16.mxu1 %v1458_v0  ;;  %v48_v44 = vld [vmem:[#allocation2 + $0x40] sm:$0xff]  ;;  %v63_v54 = vld [vmem:[#allocation2 + $0xb8] sm:$0xff]  ;;  %v66_v60 = vld [vmem:[#allocation2 + $0xd0] sm:$0xff] }
  0x44   :  { %1281 = vmatprep.subr.bf16.mxu0 %v1458_v0  ;;  %v67_v58 = vld [vmem:[#allocation2 + $0xd8] sm:$0xff]  ;;  %v68_v63 = vld [vmem:[#allocation2 + $0xe0] sm:$0xff]  ;;  %v70_v1 = vld [vmem:[#allocation2 + $0xf0] sm:$0xff] }
  0x45   :  { %v73_v2 = vld [vmem:[#allocation2 + $0x108] sm:$0xff]  ;;  %v75_v3 = vld [vmem:[#allocation2 + $0x118] sm:$0xff]  ;;  %v76_v8 = vld [vmem:[#allocation2 + $0x120] sm:$0xff] }
  0x46   :  { %1235 = vmatpush1.bf16.msra.mxu1 %v1234_v49  ;;  %v57_v49 = vld [vmem:[#allocation2 + $0x88] sm:$0xff]  ;;  %v79_v7 = vld [vmem:[#allocation2 + $0x138] sm:$0xff]  ;;  %v78_v9 = vld [vmem:[#allocation2 + $0x130] sm:$0xff] }
  0x47   :  { %1283 = vmatpush1.bf16.msra.mxu0 %v1282_v50  ;;  %1236 = vmatprep.subr.bf16.mxu1 %v1458_v0  ;;  %v59_v50 = vld [vmem:[#allocation2 + $0x98] sm:$0xff]  ;;  %v77_v6 = vld [vmem:[#allocation2 + $0x128] sm:$0xff]  ;;  %v80_v12 = vld [vmem:[#allocation2 + $0x140] sm:$0xff] }
  0x48   :  { %1284 = vmatprep.subr.bf16.mxu0 %v1458_v0  ;;  %v82_v13 = vld [vmem:[#allocation2 + $0x150] sm:$0xff]  ;;  %v85_v14 = vld [vmem:[#allocation2 + $0x168] sm:$0xff]  ;;  %v87_v15 = vld [vmem:[#allocation2 + $0x178] sm:$0xff] }
  0x49   :  { %v89_v18 = vld [vmem:[#allocation2 + $0x188] sm:$0xff]  ;;  %v91_v19 = vld [vmem:[#allocation2 + $0x198] sm:$0xff]  ;;  %v88_v20 = vld [vmem:[#allocation2 + $0x180] sm:$0xff] }
  0x4a   :  { %1238 = vmatpush1.bf16.msra.mxu1 %v1237_v55  ;;  %v60_v55 = vld [vmem:[#allocation2 + $0xa0] sm:$0xff]  ;;  %v90_v21 = vld [vmem:[#allocation2 + $0x190] sm:$0xff]  ;;  %v97_v26 = vld [vmem:[#allocation2 + $0x1c8] sm:$0xff] }
  0x4b   :  { %1286 = vmatpush1.bf16.msra.mxu0 %v1285_v56  ;;  %1239 = vmatprep.subr.bf16.mxu1 %v1458_v0  ;;  %v62_v56 = vld [vmem:[#allocation2 + $0xb0] sm:$0xff]  ;;  %v92_v24 = vld [vmem:[#allocation2 + $0x1a0] sm:$0xff]  ;;  %v99_v27 = vld [vmem:[#allocation2 + $0x1d8] sm:$0xff] }
  0x4c   :  { %1287 = vmatprep.subr.bf16.mxu0 %v1458_v0  ;;  %v94_v25 = vld [vmem:[#allocation2 + $0x1b0] sm:$0xff]  ;;  %v101_v30 = vld [vmem:[#allocation2 + $0x1e8] sm:$0xff]  ;;  %v103_v31 = vld [vmem:[#allocation2 + $0x1f8] sm:$0xff] }
  0x4d   :  { %v100_v32 = vld [vmem:[#allocation2 + $0x1e0] sm:$0xff]  ;;  %v102_v33 = vld [vmem:[#allocation2 + $0x1f0] sm:$0xff] }
  0x4e   :  { %1241 = vmatpush1.bf16.msra.mxu1 %v1240_v61  ;;  %v69_v61 = vld [vmem:[#allocation2 + $0xe8] sm:$0xff] }
  0x4f   :  { %1289 = vmatpush1.bf16.msra.mxu0 %v1288_v62  ;;  %1242 = vmatprep.subr.bf16.mxu1 %v1458_v0  ;;  %v71_v62 = vld [vmem:[#allocation2 + $0xf8] sm:$0xff] }
  0x50   :  { %1290 = vmatprep.subr.bf16.mxu0 %v1458_v0 }
  0x52   :  { %1244 = vmatpush1.bf16.msra.mxu1 %v1243_v4  ;;  %v72_v4 = vld [vmem:[#allocation2 + $0x100] sm:$0xff] }
  0x53   :  { %1292 = vmatpush1.bf16.msra.mxu0 %v1291_v5  ;;  %1245 = vmatprep.subr.bf16.mxu1 %v1458_v0  ;;  %v74_v5 = vld [vmem:[#allocation2 + $0x110] sm:$0xff] }
  0x54   :  { %1293 = vmatprep.subr.bf16.mxu0 %v1458_v0 }
  0x56   :  { %1247 = vmatpush1.bf16.msra.mxu1 %v1246_v10  ;;  %v81_v10 = vld [vmem:[#allocation2 + $0x148] sm:$0xff] }
  0x57   :  { %1295 = vmatpush1.bf16.msra.mxu0 %v1294_v11  ;;  %1248 = vmatprep.subr.bf16.mxu1 %v1458_v0  ;;  %v83_v11 = vld [vmem:[#allocation2 + $0x158] sm:$0xff] }
  0x58   :  { %1296 = vmatprep.subr.bf16.mxu0 %v1458_v0 }
  0x5a   :  { %1250 = vmatpush1.bf16.msra.mxu1 %v1249_v16  ;;  %v84_v16 = vld [vmem:[#allocation2 + $0x160] sm:$0xff] }
  0x5b   :  { %1298 = vmatpush1.bf16.msra.mxu0 %v1297_v17  ;;  %1251 = vmatprep.subr.bf16.mxu1 %v1458_v0  ;;  %v86_v17 = vld [vmem:[#allocation2 + $0x170] sm:$0xff] }
  0x5c   :  { %1299 = vmatprep.subr.bf16.mxu0 %v1458_v0 }
  0x5e   :  { %1253 = vmatpush1.bf16.msra.mxu1 %v1252_v22  ;;  %v93_v22 = vld [vmem:[#allocation2 + $0x1a8] sm:$0xff] }
  0x5f   :  { %1301 = vmatpush1.bf16.msra.mxu0 %v1300_v23  ;;  %1254 = vmatprep.subr.bf16.mxu1 %v1458_v0  ;;  %v95_v23 = vld [vmem:[#allocation2 + $0x1b8] sm:$0xff] }
  0x60   :  { %1302 = vmatprep.subr.bf16.mxu0 %v1458_v0 }
  0x62   :  { %1256 = vmatpush1.bf16.msra.mxu1 %v1255_v28  ;;  %v96_v28 = vld [vmem:[#allocation2 + $0x1c0] sm:$0xff] }
  0x63   :  { %1304 = vmatpush1.bf16.msra.mxu0 %v1303_v29  ;;  %1257 = vmatprep.subr.bf16.mxu1 %v1458_v0  ;;  %v98_v29 = vld [vmem:[#allocation2 + $0x1d0] sm:$0xff] }
  0x64   :  { %1305 = vmatprep.subr.bf16.mxu0 %v1458_v0  ;;  %v50_v0 = vld [vmem:[#allocation2 + $0x50] sm:$0xff] }
  0x66   :  { %1259 = vmatpush1.bf16.msra.mxu1 %v1258_v34  ;;  %v105_v34 = vld [vmem:[#allocation2 + $0x208] sm:$0xff] }
  0x67   :  { %1307 = vmatpush1.bf16.msra.mxu0 %v1306_v35  ;;  %v107_v35 = vld [vmem:[#allocation2 + $0x218] sm:$0xff] }
  0x69   :  { %425 = vmatmul.mubr.f32.vlgmr.msra.gmra.mrb[0].mxu1 %v40_v36  ;;  %v104_v36 = vld [vmem:[#allocation2 + $0x200] sm:$0xff] }
  0x6a   :  { %810 = vmatmul.mubr.f32.vlgmr.msra.gmra.mrb[0].mxu0 %v42_v37  ;;  %429 = vmatprep.mubr.f32.mxu1 %v45_v38  ;;  %v106_v37 = vld [vmem:[#allocation2 + $0x210] sm:$0xff]  ;;  %v109_v38 = vld [vmem:[#allocation2 + $0x228] sm:$0xff] }
  0x6b   :  { %814 = vmatprep.mubr.f32.mxu0 %v47_v39  ;;  %v111_v39 = vld [vmem:[#allocation2 + $0x238] sm:$0xff] }
  0x6d   :  { %430 = vmatmul.mubr.f32.gmra.mrb[2].mxu1 %v44_v40  ;;  %v108_v40 = vld [vmem:[#allocation2 + $0x220] sm:$0xff] }
  0x6e   :  { %815 = vmatmul.mubr.f32.gmra.mrb[2].mxu0 %v46_v41  ;;  %434 = vmatprep.mubr.f32.mxu1 %v49_v42  ;;  %v110_v41 = vld [vmem:[#allocation2 + $0x230] sm:$0xff]  ;;  %v113_v42 = vld [vmem:[#allocation2 + $0x248] sm:$0xff] }
  0x6f   :  { %819 = vmatprep.mubr.f32.mxu0 %v51_v43  ;;  %v115_v43 = vld [vmem:[#allocation2 + $0x258] sm:$0xff] }
  0x71   :  { %435 = vmatmul.mubr.f32.gmra.mrb[4].mxu1 %v48_v44  ;;  %v112_v44 = vld [vmem:[#allocation2 + $0x240] sm:$0xff] }
  0x72   :  { %820 = vmatmul.mubr.f32.gmra.mrb[4].mxu0 %v50_v0  ;;  %439 = vmatprep.mubr.f32.mxu1 %v53_v45  ;;  %v114_v0 = vld [vmem:[#allocation2 + $0x250] sm:$0xff]  ;;  %v117_v45 = vld [vmem:[#allocation2 + $0x268] sm:$0xff] }
  0x73   :  { %824 = vmatprep.mubr.f32.mxu0 %v55_v46  ;;  %v119_v46 = vld [vmem:[#allocation2 + $0x278] sm:$0xff] }
  0x75   :  { %440 = vmatmul.mubr.f32.gmra.mrb[6].mxu1 %v52_v47  ;;  %v116_v47 = vld [vmem:[#allocation2 + $0x260] sm:$0xff] }
  0x76   :  { %825 = vmatmul.mubr.f32.gmra.mrb[6].mxu0 %v54_v48  ;;  %444 = vmatprep.mubr.f32.mxu1 %v57_v49  ;;  %v118_v48 = vld [vmem:[#allocation2 + $0x270] sm:$0xff]  ;;  %v121_v49 = vld [vmem:[#allocation2 + $0x288] sm:$0xff] }
  0x77   :  { %829 = vmatprep.mubr.f32.mxu0 %v59_v50  ;;  %v123_v50 = vld [vmem:[#allocation2 + $0x298] sm:$0xff] }
  0x79   :  { %445 = vmatmul.mubr.f32.gmra.mrb[8].mxu1 %v56_v51  ;;  %v120_v51 = vld [vmem:[#allocation2 + $0x280] sm:$0xff] }
  0x7a   :  { %830 = vmatmul.mubr.f32.gmra.mrb[8].mxu0 %v58_v52  ;;  %449 = vmatprep.mubr.f32.mxu1 %v61_v53  ;;  %v122_v52 = vld [vmem:[#allocation2 + $0x290] sm:$0xff]  ;;  %v125_v53 = vld [vmem:[#allocation2 + $0x2a8] sm:$0xff] }
  0x7b   :  { %834 = vmatprep.mubr.f32.mxu0 %v63_v54  ;;  %v127_v54 = vld [vmem:[#allocation2 + $0x2b8] sm:$0xff] }
  0x7d   :  { %450 = vmatmul.mubr.f32.gmra.mrb[10].mxu1 %v60_v55  ;;  %v124_v55 = vld [vmem:[#allocation2 + $0x2a0] sm:$0xff] }
  0x7e   :  { %835 = vmatmul.mubr.f32.gmra.mrb[10].mxu0 %v62_v56  ;;  %454 = vmatprep.mubr.f32.mxu1 %v65_v57  ;;  %v126_v56 = vld [vmem:[#allocation2 + $0x2b0] sm:$0xff]  ;;  %v129_v57 = vld [vmem:[#allocation2 + $0x2c8] sm:$0xff] }
  0x7f   :  { %839 = vmatprep.mubr.f32.mxu0 %v67_v58  ;;  %v131_v58 = vld [vmem:[#allocation2 + $0x2d8] sm:$0xff] }
  0x81   :  { %455 = vmatmul.mubr.f32.gmra.mrb[12].mxu1 %v64_v59  ;;  %v128_v59 = vld [vmem:[#allocation2 + $0x2c0] sm:$0xff] }
  0x82   :  { %840 = vmatmul.mubr.f32.gmra.mrb[12].mxu0 %v66_v60  ;;  %459 = vmatprep.mubr.f32.mxu1 %v69_v61  ;;  %v130_v60 = vld [vmem:[#allocation2 + $0x2d0] sm:$0xff]  ;;  %v133_v61 = vld [vmem:[#allocation2 + $0x2e8] sm:$0xff] }
  0x83   :  { %844 = vmatprep.mubr.f32.mxu0 %v71_v62  ;;  %v135_v62 = vld [vmem:[#allocation2 + $0x2f8] sm:$0xff] }
  0x85   :  { %460 = vmatmul.mubr.f32.gmra.mrb[14].mxu1 %v68_v63  ;;  %v132_v63 = vld [vmem:[#allocation2 + $0x2e0] sm:$0xff] }
  0x86   :  { %845 = vmatmul.mubr.f32.gmra.mrb[14].mxu0 %v70_v1  ;;  %464 = vmatprep.mubr.f32.mxu1 %v73_v2  ;;  %v134_v1 = vld [vmem:[#allocation2 + $0x2f0] sm:$0xff]  ;;  %v137_v2 = vld [vmem:[#allocation2 + $0x308] sm:$0xff] }
  0x87   :  { %849 = vmatprep.mubr.f32.mxu0 %v75_v3  ;;  %v139_v3 = vld [vmem:[#allocation2 + $0x318] sm:$0xff] }
  0x89   :  { %465 = vmatmul.mubr.f32.gmra.mrb[16].mxu1 %v72_v4  ;;  %v136_v4 = vld [vmem:[#allocation2 + $0x300] sm:$0xff] }
  0x8a   :  { %850 = vmatmul.mubr.f32.gmra.mrb[16].mxu0 %v74_v5  ;;  %469 = vmatprep.mubr.f32.mxu1 %v77_v6  ;;  %v138_v5 = vld [vmem:[#allocation2 + $0x310] sm:$0xff]  ;;  %v141_v6 = vld [vmem:[#allocation2 + $0x328] sm:$0xff] }
  0x8b   :  { %854 = vmatprep.mubr.f32.mxu0 %v79_v7  ;;  %v143_v7 = vld [vmem:[#allocation2 + $0x338] sm:$0xff] }
  0x8d   :  { %470 = vmatmul.mubr.f32.gmra.mrb[18].mxu1 %v76_v8  ;;  %v140_v8 = vld [vmem:[#allocation2 + $0x320] sm:$0xff] }
  0x8e   :  { %855 = vmatmul.mubr.f32.gmra.mrb[18].mxu0 %v78_v9  ;;  %474 = vmatprep.mubr.f32.mxu1 %v81_v10  ;;  %v142_v9 = vld [vmem:[#allocation2 + $0x330] sm:$0xff]  ;;  %v145_v10 = vld [vmem:[#allocation2 + $0x348] sm:$0xff] }
  0x8f   :  { %859 = vmatprep.mubr.f32.mxu0 %v83_v11  ;;  %v147_v11 = vld [vmem:[#allocation2 + $0x358] sm:$0xff] }
  0x91   :  { %475 = vmatmul.mubr.f32.gmra.mrb[20].mxu1 %v80_v12  ;;  %v144_v12 = vld [vmem:[#allocation2 + $0x340] sm:$0xff] }
  0x92   :  { %860 = vmatmul.mubr.f32.gmra.mrb[20].mxu0 %v82_v13  ;;  %479 = vmatprep.mubr.f32.mxu1 %v85_v14  ;;  %v146_v13 = vld [vmem:[#allocation2 + $0x350] sm:$0xff]  ;;  %v149_v14 = vld [vmem:[#allocation2 + $0x368] sm:$0xff] }
  0x93   :  { %864 = vmatprep.mubr.f32.mxu0 %v87_v15  ;;  %v151_v15 = vld [vmem:[#allocation2 + $0x378] sm:$0xff] }
  0x95   :  { %480 = vmatmul.mubr.f32.gmra.mrb[22].mxu1 %v84_v16  ;;  %v148_v16 = vld [vmem:[#allocation2 + $0x360] sm:$0xff] }
  0x96   :  { %865 = vmatmul.mubr.f32.gmra.mrb[22].mxu0 %v86_v17  ;;  %484 = vmatprep.mubr.f32.mxu1 %v89_v18  ;;  %v150_v17 = vld [vmem:[#allocation2 + $0x370] sm:$0xff]  ;;  %v153_v18 = vld [vmem:[#allocation2 + $0x388] sm:$0xff] }
  0x97   :  { %869 = vmatprep.mubr.f32.mxu0 %v91_v19  ;;  %v155_v19 = vld [vmem:[#allocation2 + $0x398] sm:$0xff] }
  0x99   :  { %485 = vmatmul.mubr.f32.gmra.mrb[24].mxu1 %v88_v20  ;;  %v152_v20 = vld [vmem:[#allocation2 + $0x380] sm:$0xff] }
  0x9a   :  { %870 = vmatmul.mubr.f32.gmra.mrb[24].mxu0 %v90_v21  ;;  %489 = vmatprep.mubr.f32.mxu1 %v93_v22  ;;  %v154_v21 = vld [vmem:[#allocation2 + $0x390] sm:$0xff]  ;;  %v157_v22 = vld [vmem:[#allocation2 + $0x3a8] sm:$0xff] }
  0x9b   :  { %874 = vmatprep.mubr.f32.mxu0 %v95_v23  ;;  %v159_v23 = vld [vmem:[#allocation2 + $0x3b8] sm:$0xff] }
  0x9d   :  { %490 = vmatmul.mubr.f32.gmra.mrb[26].mxu1 %v92_v24  ;;  %v156_v24 = vld [vmem:[#allocation2 + $0x3a0] sm:$0xff] }
  0x9e   :  { %875 = vmatmul.mubr.f32.gmra.mrb[26].mxu0 %v94_v25  ;;  %494 = vmatprep.mubr.f32.mxu1 %v97_v26  ;;  %v158_v25 = vld [vmem:[#allocation2 + $0x3b0] sm:$0xff]  ;;  %v161_v26 = vld [vmem:[#allocation2 + $0x3c8] sm:$0xff] }
  0x9f   :  { %879 = vmatprep.mubr.f32.mxu0 %v99_v27  ;;  %v163_v27 = vld [vmem:[#allocation2 + $0x3d8] sm:$0xff] }
  0xa1   :  { %495 = vmatmul.mubr.f32.gmra.mrb[28].mxu1 %v96_v28  ;;  %v160_v28 = vld [vmem:[#allocation2 + $0x3c0] sm:$0xff] }
  0xa2   :  { %880 = vmatmul.mubr.f32.gmra.mrb[28].mxu0 %v98_v29  ;;  %499 = vmatprep.mubr.f32.mxu1 %v101_v30  ;;  %v162_v29 = vld [vmem:[#allocation2 + $0x3d0] sm:$0xff]  ;;  %v165_v30 = vld [vmem:[#allocation2 + $0x3e8] sm:$0xff] }
  0xa3   :  { %884 = vmatprep.mubr.f32.mxu0 %v103_v31  ;;  %v167_v31 = vld [vmem:[#allocation2 + $0x3f8] sm:$0xff] }
  0xa5   :  { %500 = vmatmul.mubr.f32.gmra.mrb[30].mxu1 %v100_v32  ;;  %v164_v32 = vld [vmem:[#allocation2 + $0x3e0] sm:$0xff] }
  0xa6   :  { %885 = vmatmul.mubr.f32.gmra.mrb[30].mxu0 %v102_v33  ;;  %504 = vmatprep.mubr.f32.mxu1 %v105_v34  ;;  %v166_v33 = vld [vmem:[#allocation2 + $0x3f0] sm:$0xff]  ;;  %v169_v34 = vld [vmem:[#allocation2 + $0x408] sm:$0xff] }
  0xa7   :  { %889 = vmatprep.mubr.f32.mxu0 %v107_v35  ;;  %v171_v35 = vld [vmem:[#allocation2 + $0x418] sm:$0xff] }
  0xa9   :  { %505 = vmatmul.mubr.f32.gmra.mrb[32].mxu1 %v104_v36  ;;  %v168_v36 = vld [vmem:[#allocation2 + $0x400] sm:$0xff] }
  0xaa   :  { %890 = vmatmul.mubr.f32.gmra.mrb[32].mxu0 %v106_v37  ;;  %509 = vmatprep.mubr.f32.mxu1 %v109_v38  ;;  %v170_v37 = vld [vmem:[#allocation2 + $0x410] sm:$0xff]  ;;  %v173_v38 = vld [vmem:[#allocation2 + $0x428] sm:$0xff] }
  0xab   :  { %894 = vmatprep.mubr.f32.mxu0 %v111_v39  ;;  %v175_v39 = vld [vmem:[#allocation2 + $0x438] sm:$0xff] }
  0xad   :  { %510 = vmatmul.mubr.f32.gmra.mrb[34].mxu1 %v108_v40  ;;  %v172_v40 = vld [vmem:[#allocation2 + $0x420] sm:$0xff] }
  0xae   :  { %895 = vmatmul.mubr.f32.gmra.mrb[34].mxu0 %v110_v41  ;;  %514 = vmatprep.mubr.f32.mxu1 %v113_v42  ;;  %v174_v41 = vld [vmem:[#allocation2 + $0x430] sm:$0xff]  ;;  %v177_v42 = vld [vmem:[#allocation2 + $0x448] sm:$0xff] }
  0xaf   :  { %899 = vmatprep.mubr.f32.mxu0 %v115_v43  ;;  %v179_v43 = vld [vmem:[#allocation2 + $0x458] sm:$0xff] }
  0xb1   :  { %515 = vmatmul.mubr.f32.gmra.mrb[36].mxu1 %v112_v44  ;;  %v176_v44 = vld [vmem:[#allocation2 + $0x440] sm:$0xff] }
  0xb2   :  { %900 = vmatmul.mubr.f32.gmra.mrb[36].mxu0 %v114_v0  ;;  %519 = vmatprep.mubr.f32.mxu1 %v117_v45  ;;  %v178_v0 = vld [vmem:[#allocation2 + $0x450] sm:$0xff]  ;;  %v181_v45 = vld [vmem:[#allocation2 + $0x468] sm:$0xff] }
  0xb3   :  { %904 = vmatprep.mubr.f32.mxu0 %v119_v46  ;;  %v183_v46 = vld [vmem:[#allocation2 + $0x478] sm:$0xff] }
  0xb5   :  { %520 = vmatmul.mubr.f32.gmra.mrb[38].mxu1 %v116_v47  ;;  %v180_v47 = vld [vmem:[#allocation2 + $0x460] sm:$0xff] }
  0xb6   :  { %905 = vmatmul.mubr.f32.gmra.mrb[38].mxu0 %v118_v48  ;;  %524 = vmatprep.mubr.f32.mxu1 %v121_v49  ;;  %v182_v48 = vld [vmem:[#allocation2 + $0x470] sm:$0xff]  ;;  %v185_v49 = vld [vmem:[#allocation2 + $0x488] sm:$0xff] }
  0xb7   :  { %909 = vmatprep.mubr.f32.mxu0 %v123_v50  ;;  %v187_v50 = vld [vmem:[#allocation2 + $0x498] sm:$0xff] }
  0xb9   :  { %525 = vmatmul.mubr.f32.gmra.mrb[40].mxu1 %v120_v51  ;;  %v184_v51 = vld [vmem:[#allocation2 + $0x480] sm:$0xff] }
  0xba   :  { %910 = vmatmul.mubr.f32.gmra.mrb[40].mxu0 %v122_v52  ;;  %529 = vmatprep.mubr.f32.mxu1 %v125_v53  ;;  %v186_v52 = vld [vmem:[#allocation2 + $0x490] sm:$0xff]  ;;  %v189_v53 = vld [vmem:[#allocation2 + $0x4a8] sm:$0xff] }
  0xbb   :  { %914 = vmatprep.mubr.f32.mxu0 %v127_v54  ;;  %v191_v54 = vld [vmem:[#allocation2 + $0x4b8] sm:$0xff] }
  0xbd   :  { %530 = vmatmul.mubr.f32.gmra.mrb[42].mxu1 %v124_v55  ;;  %v188_v55 = vld [vmem:[#allocation2 + $0x4a0] sm:$0xff] }
  0xbe   :  { %915 = vmatmul.mubr.f32.gmra.mrb[42].mxu0 %v126_v56  ;;  %534 = vmatprep.mubr.f32.mxu1 %v129_v57  ;;  %v190_v56 = vld [vmem:[#allocation2 + $0x4b0] sm:$0xff]  ;;  %v193_v57 = vld [vmem:[#allocation2 + $0x4c8] sm:$0xff] }
  0xbf   :  { %919 = vmatprep.mubr.f32.mxu0 %v131_v58  ;;  %v195_v58 = vld [vmem:[#allocation2 + $0x4d8] sm:$0xff] }
  0xc1   :  { %535 = vmatmul.mubr.f32.gmra.mrb[44].mxu1 %v128_v59  ;;  %v192_v59 = vld [vmem:[#allocation2 + $0x4c0] sm:$0xff] }
  0xc2   :  { %920 = vmatmul.mubr.f32.gmra.mrb[44].mxu0 %v130_v60  ;;  %539 = vmatprep.mubr.f32.mxu1 %v133_v61  ;;  %v194_v60 = vld [vmem:[#allocation2 + $0x4d0] sm:$0xff]  ;;  %v197_v61 = vld [vmem:[#allocation2 + $0x4e8] sm:$0xff] }
  0xc3   :  { %924 = vmatprep.mubr.f32.mxu0 %v135_v62  ;;  %v199_v62 = vld [vmem:[#allocation2 + $0x4f8] sm:$0xff] }
  0xc5   :  { %540 = vmatmul.mubr.f32.gmra.mrb[46].mxu1 %v132_v63  ;;  %v196_v63 = vld [vmem:[#allocation2 + $0x4e0] sm:$0xff] }
  0xc6   :  { %925 = vmatmul.mubr.f32.gmra.mrb[46].mxu0 %v134_v1  ;;  %544 = vmatprep.mubr.f32.mxu1 %v137_v2  ;;  %v198_v1 = vld [vmem:[#allocation2 + $0x4f0] sm:$0xff]  ;;  %v201_v2 = vld [vmem:[#allocation2 + $0x508] sm:$0xff] }
  0xc7   :  { %929 = vmatprep.mubr.f32.mxu0 %v139_v3  ;;  %v203_v3 = vld [vmem:[#allocation2 + $0x518] sm:$0xff] }
  0xc9   :  { %545 = vmatmul.mubr.f32.gmra.mrb[48].mxu1 %v136_v4  ;;  %v200_v4 = vld [vmem:[#allocation2 + $0x500] sm:$0xff] }
  0xca   :  { %930 = vmatmul.mubr.f32.gmra.mrb[48].mxu0 %v138_v5  ;;  %549 = vmatprep.mubr.f32.mxu1 %v141_v6  ;;  %v202_v5 = vld [vmem:[#allocation2 + $0x510] sm:$0xff]  ;;  %v205_v6 = vld [vmem:[#allocation2 + $0x528] sm:$0xff] }
  0xcb   :  { %934 = vmatprep.mubr.f32.mxu0 %v143_v7  ;;  %v207_v7 = vld [vmem:[#allocation2 + $0x538] sm:$0xff] }
  0xcd   :  { %550 = vmatmul.mubr.f32.gmra.mrb[50].mxu1 %v140_v8  ;;  %v204_v8 = vld [vmem:[#allocation2 + $0x520] sm:$0xff] }
  0xce   :  { %935 = vmatmul.mubr.f32.gmra.mrb[50].mxu0 %v142_v9  ;;  %554 = vmatprep.mubr.f32.mxu1 %v145_v10  ;;  %v206_v9 = vld [vmem:[#allocation2 + $0x530] sm:$0xff]  ;;  %v209_v10 = vld [vmem:[#allocation2 + $0x548] sm:$0xff] }
  0xcf   :  { %939 = vmatprep.mubr.f32.mxu0 %v147_v11  ;;  %v211_v11 = vld [vmem:[#allocation2 + $0x558] sm:$0xff] }
  0xd1   :  { %555 = vmatmul.mubr.f32.gmra.mrb[52].mxu1 %v144_v12  ;;  %v208_v12 = vld [vmem:[#allocation2 + $0x540] sm:$0xff] }
  0xd2   :  { %940 = vmatmul.mubr.f32.gmra.mrb[52].mxu0 %v146_v13  ;;  %559 = vmatprep.mubr.f32.mxu1 %v149_v14  ;;  %v210_v13 = vld [vmem:[#allocation2 + $0x550] sm:$0xff]  ;;  %v213_v14 = vld [vmem:[#allocation2 + $0x568] sm:$0xff] }
  0xd3   :  { %944 = vmatprep.mubr.f32.mxu0 %v151_v15  ;;  %v215_v15 = vld [vmem:[#allocation2 + $0x578] sm:$0xff] }
  0xd5   :  { %560 = vmatmul.mubr.f32.gmra.mrb[54].mxu1 %v148_v16  ;;  %v212_v16 = vld [vmem:[#allocation2 + $0x560] sm:$0xff] }
  0xd6   :  { %945 = vmatmul.mubr.f32.gmra.mrb[54].mxu0 %v150_v17  ;;  %564 = vmatprep.mubr.f32.mxu1 %v153_v18  ;;  %v214_v17 = vld [vmem:[#allocation2 + $0x570] sm:$0xff]  ;;  %v217_v18 = vld [vmem:[#allocation2 + $0x588] sm:$0xff] }
  0xd7   :  { %949 = vmatprep.mubr.f32.mxu0 %v155_v19  ;;  %v219_v19 = vld [vmem:[#allocation2 + $0x598] sm:$0xff] }
  0xd9   :  { %565 = vmatmul.mubr.f32.gmra.mrb[56].mxu1 %v152_v20  ;;  %v216_v20 = vld [vmem:[#allocation2 + $0x580] sm:$0xff] }
  0xda   :  { %950 = vmatmul.mubr.f32.gmra.mrb[56].mxu0 %v154_v21  ;;  %569 = vmatprep.mubr.f32.mxu1 %v157_v22  ;;  %v218_v21 = vld [vmem:[#allocation2 + $0x590] sm:$0xff]  ;;  %v221_v22 = vld [vmem:[#allocation2 + $0x5a8] sm:$0xff] }
  0xdb   :  { %954 = vmatprep.mubr.f32.mxu0 %v159_v23  ;;  %v223_v23 = vld [vmem:[#allocation2 + $0x5b8] sm:$0xff] }
  0xdd   :  { %570 = vmatmul.mubr.f32.gmra.mrb[58].mxu1 %v156_v24  ;;  %v220_v24 = vld [vmem:[#allocation2 + $0x5a0] sm:$0xff] }
  0xde   :  { %955 = vmatmul.mubr.f32.gmra.mrb[58].mxu0 %v158_v25  ;;  %574 = vmatprep.mubr.f32.mxu1 %v161_v26  ;;  %v222_v25 = vld [vmem:[#allocation2 + $0x5b0] sm:$0xff]  ;;  %v225_v26 = vld [vmem:[#allocation2 + $0x5c8] sm:$0xff] }
  0xdf   :  { %959 = vmatprep.mubr.f32.mxu0 %v163_v27  ;;  %v227_v27 = vld [vmem:[#allocation2 + $0x5d8] sm:$0xff] }
  0xe1   :  { %575 = vmatmul.mubr.f32.gmra.mrb[60].mxu1 %v160_v28  ;;  %v224_v28 = vld [vmem:[#allocation2 + $0x5c0] sm:$0xff] }
  0xe2   :  { %960 = vmatmul.mubr.f32.gmra.mrb[60].mxu0 %v162_v29  ;;  %579 = vmatprep.mubr.f32.mxu1 %v165_v30  ;;  %v226_v29 = vld [vmem:[#allocation2 + $0x5d0] sm:$0xff]  ;;  %v229_v30 = vld [vmem:[#allocation2 + $0x5e8] sm:$0xff] }
  0xe3   :  { %964 = vmatprep.mubr.f32.mxu0 %v167_v31  ;;  %v231_v31 = vld [vmem:[#allocation2 + $0x5f8] sm:$0xff] }
  0xe5   :  { %580 = vmatmul.mubr.f32.gmra.mrb[62].mxu1 %v164_v32  ;;  %v228_v32 = vld [vmem:[#allocation2 + $0x5e0] sm:$0xff] }
  0xe6   :  { %965 = vmatmul.mubr.f32.gmra.mrb[62].mxu0 %v166_v33  ;;  %584 = vmatprep.mubr.f32.mxu1 %v169_v34  ;;  %v230_v33 = vld [vmem:[#allocation2 + $0x5f0] sm:$0xff]  ;;  %v233_v34 = vld [vmem:[#allocation2 + $0x608] sm:$0xff] }
  0xe7   :  { %969 = vmatprep.mubr.f32.mxu0 %v171_v35  ;;  %v235_v35 = vld [vmem:[#allocation2 + $0x618] sm:$0xff] }
  0xe9   :  { %585 = vmatmul.mubr.f32.gmra.mrb[64].mxu1 %v168_v36  ;;  %v232_v36 = vld [vmem:[#allocation2 + $0x600] sm:$0xff] }
  0xea   :  { %970 = vmatmul.mubr.f32.gmra.mrb[64].mxu0 %v170_v37  ;;  %589 = vmatprep.mubr.f32.mxu1 %v173_v38  ;;  %v234_v37 = vld [vmem:[#allocation2 + $0x610] sm:$0xff]  ;;  %v237_v38 = vld [vmem:[#allocation2 + $0x628] sm:$0xff] }
  0xeb   :  { %974 = vmatprep.mubr.f32.mxu0 %v175_v39  ;;  %v239_v39 = vld [vmem:[#allocation2 + $0x638] sm:$0xff] }
  0xed   :  { %590 = vmatmul.mubr.f32.gmra.mrb[66].mxu1 %v172_v40  ;;  %v236_v40 = vld [vmem:[#allocation2 + $0x620] sm:$0xff] }
  0xee   :  { %975 = vmatmul.mubr.f32.gmra.mrb[66].mxu0 %v174_v41  ;;  %594 = vmatprep.mubr.f32.mxu1 %v177_v42  ;;  %v238_v41 = vld [vmem:[#allocation2 + $0x630] sm:$0xff]  ;;  %v241_v42 = vld [vmem:[#allocation2 + $0x648] sm:$0xff] }
  0xef   :  { %979 = vmatprep.mubr.f32.mxu0 %v179_v43  ;;  %v243_v43 = vld [vmem:[#allocation2 + $0x658] sm:$0xff] }
  0xf1   :  { %595 = vmatmul.mubr.f32.gmra.mrb[68].mxu1 %v176_v44  ;;  %v240_v44 = vld [vmem:[#allocation2 + $0x640] sm:$0xff] }
  0xf2   :  { %980 = vmatmul.mubr.f32.gmra.mrb[68].mxu0 %v178_v0  ;;  %599 = vmatprep.mubr.f32.mxu1 %v181_v45  ;;  %v242_v0 = vld [vmem:[#allocation2 + $0x650] sm:$0xff]  ;;  %v245_v45 = vld [vmem:[#allocation2 + $0x668] sm:$0xff] }
  0xf3   :  { %984 = vmatprep.mubr.f32.mxu0 %v183_v46  ;;  %v247_v46 = vld [vmem:[#allocation2 + $0x678] sm:$0xff] }
  0xf5   :  { %600 = vmatmul.mubr.f32.gmra.mrb[70].mxu1 %v180_v47  ;;  %v244_v47 = vld [vmem:[#allocation2 + $0x660] sm:$0xff] }
  0xf6   :  { %985 = vmatmul.mubr.f32.gmra.mrb[70].mxu0 %v182_v48  ;;  %604 = vmatprep.mubr.f32.mxu1 %v185_v49  ;;  %v246_v48 = vld [vmem:[#allocation2 + $0x670] sm:$0xff]  ;;  %v249_v49 = vld [vmem:[#allocation2 + $0x688] sm:$0xff] }
  0xf7   :  { %989 = vmatprep.mubr.f32.mxu0 %v187_v50  ;;  %v251_v50 = vld [vmem:[#allocation2 + $0x698] sm:$0xff] }
  0xf9   :  { %605 = vmatmul.mubr.f32.gmra.mrb[72].mxu1 %v184_v51  ;;  %v248_v51 = vld [vmem:[#allocation2 + $0x680] sm:$0xff] }
  0xfa   :  { %990 = vmatmul.mubr.f32.gmra.mrb[72].mxu0 %v186_v52  ;;  %609 = vmatprep.mubr.f32.mxu1 %v189_v53  ;;  %v250_v52 = vld [vmem:[#allocation2 + $0x690] sm:$0xff]  ;;  %v253_v53 = vld [vmem:[#allocation2 + $0x6a8] sm:$0xff] }
  0xfb   :  { %994 = vmatprep.mubr.f32.mxu0 %v191_v54  ;;  %v255_v54 = vld [vmem:[#allocation2 + $0x6b8] sm:$0xff] }
  0xfd   :  { %610 = vmatmul.mubr.f32.gmra.mrb[74].mxu1 %v188_v55  ;;  %v252_v55 = vld [vmem:[#allocation2 + $0x6a0] sm:$0xff] }
  0xfe   :  { %995 = vmatmul.mubr.f32.gmra.mrb[74].mxu0 %v190_v56  ;;  %614 = vmatprep.mubr.f32.mxu1 %v193_v57  ;;  %v254_v56 = vld [vmem:[#allocation2 + $0x6b0] sm:$0xff]  ;;  %v257_v57 = vld [vmem:[#allocation2 + $0x6c8] sm:$0xff] }
  0xff   :  { %999 = vmatprep.mubr.f32.mxu0 %v195_v58 }
 0x101   :  { %615 = vmatmul.mubr.f32.gmra.mrb[76].mxu1 %v192_v59  ;;  %v259_v59 = vld [vmem:[#allocation2 + $0x6d8] sm:$0xff] }
 0x102   :  { %1000 = vmatmul.mubr.f32.gmra.mrb[76].mxu0 %v194_v60  ;;  %619 = vmatprep.mubr.f32.mxu1 %v197_v61 }
 0x103   :  { %1004 = vmatprep.mubr.f32.mxu0 %v199_v62 }
 0x105   :  { %620 = vmatmul.mubr.f32.gmra.mrb[78].mxu1 %v196_v63 }
 0x106   :  { %1005 = vmatmul.mubr.f32.gmra.mrb[78].mxu0 %v198_v1  ;;  %624 = vmatprep.mubr.f32.mxu1 %v201_v2  ;;  %v256_v1 = vld [vmem:[#allocation2 + $0x6c0] sm:$0xff]  ;;  %v258_v2 = vld [vmem:[#allocation2 + $0x6d0] sm:$0xff] }
 0x107   :  { %1009 = vmatprep.mubr.f32.mxu0 %v203_v3  ;;  %v261_v3 = vld [vmem:[#allocation2 + $0x6e8] sm:$0xff] }
 0x109   :  { %625 = vmatmul.mubr.f32.gmra.mrb[80].mxu1 %v200_v4 }
 0x10a   :  { %1010 = vmatmul.mubr.f32.gmra.mrb[80].mxu0 %v202_v5  ;;  %629 = vmatprep.mubr.f32.mxu1 %v205_v6  ;;  %v263_v5 = vld [vmem:[#allocation2 + $0x6f8] sm:$0xff] }
 0x10b   :  { %1014 = vmatprep.mubr.f32.mxu0 %v207_v7 }
 0x10d   :  { %630 = vmatmul.mubr.f32.gmra.mrb[82].mxu1 %v204_v8 }
 0x10e   :  { %1015 = vmatmul.mubr.f32.gmra.mrb[82].mxu0 %v206_v9  ;;  %634 = vmatprep.mubr.f32.mxu1 %v209_v10  ;;  %v260_v10 = vld [vmem:[#allocation2 + $0x6e0] sm:$0xff] }
 0x10f   :  { %1019 = vmatprep.mubr.f32.mxu0 %v211_v11  ;;  %v262_v11 = vld [vmem:[#allocation2 + $0x6f0] sm:$0xff] }
 0x111   :  { %635 = vmatmul.mubr.f32.gmra.mrb[84].mxu1 %v208_v12  ;;  %v265_v12 = vld [vmem:[#allocation2 + $0x708] sm:$0xff] }
 0x112   :  { %1020 = vmatmul.mubr.f32.gmra.mrb[84].mxu0 %v210_v13  ;;  %639 = vmatprep.mubr.f32.mxu1 %v213_v14  ;;  %v267_v14 = vld [vmem:[#allocation2 + $0x718] sm:$0xff] }
 0x113   :  { %1024 = vmatprep.mubr.f32.mxu0 %v215_v15 }
 0x115   :  { %640 = vmatmul.mubr.f32.gmra.mrb[86].mxu1 %v212_v16 }
 0x116   :  { %1025 = vmatmul.mubr.f32.gmra.mrb[86].mxu0 %v214_v17  ;;  %644 = vmatprep.mubr.f32.mxu1 %v217_v18 }
 0x117   :  { %1029 = vmatprep.mubr.f32.mxu0 %v219_v19  ;;  %v264_v19 = vld [vmem:[#allocation2 + $0x700] sm:$0xff] }
 0x119   :  { %645 = vmatmul.mubr.f32.gmra.mrb[88].mxu1 %v216_v20  ;;  %v266_v20 = vld [vmem:[#allocation2 + $0x710] sm:$0xff] }
 0x11a   :  { %1030 = vmatmul.mubr.f32.gmra.mrb[88].mxu0 %v218_v21  ;;  %649 = vmatprep.mubr.f32.mxu1 %v221_v22  ;;  %v269_v21 = vld [vmem:[#allocation2 + $0x728] sm:$0xff] }
 0x11b   :  { %1034 = vmatprep.mubr.f32.mxu0 %v223_v23  ;;  %v271_v23 = vld [vmem:[#allocation2 + $0x738] sm:$0xff] }
 0x11d   :  { %650 = vmatmul.mubr.f32.gmra.mrb[90].mxu1 %v220_v24 }
 0x11e   :  { %1035 = vmatmul.mubr.f32.gmra.mrb[90].mxu0 %v222_v25  ;;  %654 = vmatprep.mubr.f32.mxu1 %v225_v26 }
 0x11f   :  { %1039 = vmatprep.mubr.f32.mxu0 %v227_v27 }
 0x121   :  { %655 = vmatmul.mubr.f32.gmra.mrb[92].mxu1 %v224_v28  ;;  %v268_v28 = vld [vmem:[#allocation2 + $0x720] sm:$0xff] }
 0x122   :  { %1040 = vmatmul.mubr.f32.gmra.mrb[92].mxu0 %v226_v29  ;;  %659 = vmatprep.mubr.f32.mxu1 %v229_v30  ;;  %v270_v29 = vld [vmem:[#allocation2 + $0x730] sm:$0xff]  ;;  %v273_v30 = vld [vmem:[#allocation2 + $0x748] sm:$0xff] }
 0x123   :  { %1044 = vmatprep.mubr.f32.mxu0 %v231_v31 }
 0x125   :  { %660 = vmatmul.mubr.f32.gmra.mrb[94].mxu1 %v228_v32  ;;  %v275_v32 = vld [vmem:[#allocation2 + $0x758] sm:$0xff] }
 0x126   :  { %1045 = vmatmul.mubr.f32.gmra.mrb[94].mxu0 %v230_v33  ;;  %664 = vmatprep.mubr.f32.mxu1 %v233_v34 }
 0x127   :  { %1049 = vmatprep.mubr.f32.mxu0 %v235_v35 }
 0x129   :  { %665 = vmatmul.mubr.f32.gmra.mrb[96].mxu1 %v232_v36 }
 0x12a   :  { %1050 = vmatmul.mubr.f32.gmra.mrb[96].mxu0 %v234_v37  ;;  %669 = vmatprep.mubr.f32.mxu1 %v237_v38  ;;  %v272_v37 = vld [vmem:[#allocation2 + $0x740] sm:$0xff]  ;;  %v274_v38 = vld [vmem:[#allocation2 + $0x750] sm:$0xff] }
 0x12b   :  { %1054 = vmatprep.mubr.f32.mxu0 %v239_v39  ;;  %v277_v39 = vld [vmem:[#allocation2 + $0x768] sm:$0xff] }
 0x12d   :  { %670 = vmatmul.mubr.f32.gmra.mrb[98].mxu1 %v236_v40 }
 0x12e   :  { %1055 = vmatmul.mubr.f32.gmra.mrb[98].mxu0 %v238_v41  ;;  %674 = vmatprep.mubr.f32.mxu1 %v241_v42  ;;  %v279_v41 = vld [vmem:[#allocation2 + $0x778] sm:$0xff] }
 0x12f   :  { %1059 = vmatprep.mubr.f32.mxu0 %v243_v43 }
 0x131   :  { %675 = vmatmul.mubr.f32.gmra.mrb[100].mxu1 %v240_v44 }
 0x132   :  { %1060 = vmatmul.mubr.f32.gmra.mrb[100].mxu0 %v242_v0  ;;  %679 = vmatprep.mubr.f32.mxu1 %v245_v45  ;;  %v276_v45 = vld [vmem:[#allocation2 + $0x760] sm:$0xff] }
 0x133   :  { %1064 = vmatprep.mubr.f32.mxu0 %v247_v46  ;;  %v278_v46 = vld [vmem:[#allocation2 + $0x770] sm:$0xff] }
 0x135   :  { %680 = vmatmul.mubr.f32.gmra.mrb[102].mxu1 %v244_v47  ;;  %v281_v47 = vld [vmem:[#allocation2 + $0x788] sm:$0xff] }
 0x136   :  { %1065 = vmatmul.mubr.f32.gmra.mrb[102].mxu0 %v246_v48  ;;  %684 = vmatprep.mubr.f32.mxu1 %v249_v49  ;;  %v283_v49 = vld [vmem:[#allocation2 + $0x798] sm:$0xff] }
 0x137   :  { %1069 = vmatprep.mubr.f32.mxu0 %v251_v50 }
 0x139   :  { %685 = vmatmul.mubr.f32.gmra.mrb[104].mxu1 %v248_v51 }
 0x13a   :  { %1070 = vmatmul.mubr.f32.gmra.mrb[104].mxu0 %v250_v52  ;;  %689 = vmatprep.mubr.f32.mxu1 %v253_v53 }
 0x13b   :  { %1074 = vmatprep.mubr.f32.mxu0 %v255_v54  ;;  %v280_v54 = vld [vmem:[#allocation2 + $0x780] sm:$0xff] }
 0x13c   :  { %v426_v58 = vpop.f32.mrb[0].mxu1 }
 0x13d   :  { %v811_v60 = vpop.f32.mrb[0].mxu0  ;;  %v428_v61 = vpop.f32.mrb[1].mxu1  ;;  %690 = vmatmul.mubr.f32.gmra.mrb[106].mxu1 %v252_v55  ;;  %v282_v55 = vld [vmem:[#allocation2 + $0x790] sm:$0xff] }
 0x13e   :  { %v812_v62 = vadd.f32 %v811_v60, %v426_v58  ;;  %v813_v63 = vpop.f32.mrb[1].mxu0  ;;  %1075 = vmatmul.mubr.f32.gmra.mrb[106].mxu0 %v254_v56  ;;  %694 = vmatprep.mubr.f32.mxu1 %v257_v57  ;;  %v285_v56 = vld [vmem:[#allocation2 + $0x7a8] sm:$0xff]  ;;  %v287_v58 = vld [vmem:[#allocation2 + $0x7b8] sm:$0xff] }
 0x13f   :  { %1079 = vmatprep.mubr.f32.mxu0 %v259_v59  ;;  %v284_v63 = vld [vmem:[#allocation2 + $0x7a0] sm:$0xff] }
 0x140   :  { %1130 = vst [vmem:[#allocation7] sm:$0xff] %v812_v62  ;;  %v431_v4 = vpop.f32.mrb[2].mxu1 }
 0x141   :  { %v816_v6 = vpop.f32.mrb[2].mxu0  ;;  %v433_v7 = vpop.f32.mrb[3].mxu1  ;;  %695 = vmatmul.mubr.f32.gmra.mrb[108].mxu1 %v256_v1  ;;  %v286_v1 = vld [vmem:[#allocation2 + $0x7b0] sm:$0xff] }
 0x142   :  { %v817_v8 = vadd.f32 %v816_v6, %v431_v4  ;;  %v818_v9 = vpop.f32.mrb[3].mxu0  ;;  %1080 = vmatmul.mubr.f32.gmra.mrb[108].mxu0 %v258_v2  ;;  %699 = vmatprep.mubr.f32.mxu1 %v261_v3  ;;  %v289_v2 = vld [vmem:[#allocation2 + $0x7c8] sm:$0xff]  ;;  %v291_v4 = vld [vmem:[#allocation2 + $0x7d8] sm:$0xff] }
 0x143   :  { %1084 = vmatprep.mubr.f32.mxu0 %v263_v5  ;;  %v288_v9 = vld [vmem:[#allocation2 + $0x7c0] sm:$0xff] }
 0x144   :  { %1131 = vst [vmem:[#allocation7 + $0x8] sm:$0xff] %v817_v8  ;;  %v436_v13 = vpop.f32.mrb[4].mxu1 }
 0x145   :  { %v821_v15 = vpop.f32.mrb[4].mxu0  ;;  %v438_v16 = vpop.f32.mrb[5].mxu1  ;;  %700 = vmatmul.mubr.f32.gmra.mrb[110].mxu1 %v260_v10  ;;  %v290_v10 = vld [vmem:[#allocation2 + $0x7d0] sm:$0xff] }
 0x146   :  { %v822_v17 = vadd.f32 %v821_v15, %v436_v13  ;;  %v823_v18 = vpop.f32.mrb[5].mxu0  ;;  %1085 = vmatmul.mubr.f32.gmra.mrb[110].mxu0 %v262_v11  ;;  %704 = vmatprep.mubr.f32.mxu1 %v265_v12  ;;  %v293_v11 = vld [vmem:[#allocation2 + $0x7e8] sm:$0xff]  ;;  %v295_v13 = vld [vmem:[#allocation2 + $0x7f8] sm:$0xff] }
 0x147   :  { %1089 = vmatprep.mubr.f32.mxu0 %v267_v14  ;;  %v292_v18 = vld [vmem:[#allocation2 + $0x7e0] sm:$0xff] }
 0x148   :  { %1132 = vst [vmem:[#allocation7 + $0x10] sm:$0xff] %v822_v17  ;;  %v441_v22 = vpop.f32.mrb[6].mxu1 }
 0x149   :  { %v826_v24 = vpop.f32.mrb[6].mxu0  ;;  %v443_v25 = vpop.f32.mrb[7].mxu1  ;;  %705 = vmatmul.mubr.f32.gmra.mrb[112].mxu1 %v264_v19  ;;  %v294_v19 = vld [vmem:[#allocation2 + $0x7f0] sm:$0xff] }
 0x14a   :  { %v827_v26 = vadd.f32 %v826_v24, %v441_v22  ;;  %v828_v27 = vpop.f32.mrb[7].mxu0  ;;  %1090 = vmatmul.mubr.f32.gmra.mrb[112].mxu0 %v266_v20  ;;  %709 = vmatprep.mubr.f32.mxu1 %v269_v21 }
 0x14b   :  { %1094 = vmatprep.mubr.f32.mxu0 %v271_v23 }
 0x14c   :  { %1133 = vst [vmem:[#allocation7 + $0x18] sm:$0xff] %v827_v26  ;;  %v446_v31 = vpop.f32.mrb[8].mxu1 }
 0x14d   :  { %v831_v33 = vpop.f32.mrb[8].mxu0  ;;  %v448_v34 = vpop.f32.mrb[9].mxu1  ;;  %710 = vmatmul.mubr.f32.gmra.mrb[114].mxu1 %v268_v28 }
 0x14e   :  { %v832_v35 = vadd.f32 %v831_v33, %v446_v31  ;;  %v833_v36 = vpop.f32.mrb[9].mxu0  ;;  %1095 = vmatmul.mubr.f32.gmra.mrb[114].mxu0 %v270_v29  ;;  %714 = vmatprep.mubr.f32.mxu1 %v273_v30 }
 0x14f   :  { %1099 = vmatprep.mubr.f32.mxu0 %v275_v32 }
 0x150   :  { %1134 = vst [vmem:[#allocation7 + $0x20] sm:$0xff] %v832_v35  ;;  %v451_v40 = vpop.f32.mrb[10].mxu1 }
 0x151   :  { %v836_v42 = vpop.f32.mrb[10].mxu0  ;;  %v453_v43 = vpop.f32.mrb[11].mxu1  ;;  %715 = vmatmul.mubr.f32.gmra.mrb[116].mxu1 %v272_v37 }
 0x152   :  { %v837_v44 = vadd.f32 %v836_v42, %v451_v40  ;;  %v838_v0 = vpop.f32.mrb[11].mxu0  ;;  %1100 = vmatmul.mubr.f32.gmra.mrb[116].mxu0 %v274_v38  ;;  %719 = vmatprep.mubr.f32.mxu1 %v277_v39 }
 0x153   :  { %1104 = vmatprep.mubr.f32.mxu0 %v279_v41 }
 0x154   :  { %1135 = vst [vmem:[#allocation7 + $0x28] sm:$0xff] %v837_v44  ;;  %v456_v48 = vpop.f32.mrb[12].mxu1 }
 0x155   :  { %v841_v50 = vpop.f32.mrb[12].mxu0  ;;  %v458_v51 = vpop.f32.mrb[13].mxu1  ;;  %720 = vmatmul.mubr.f32.gmra.mrb[118].mxu1 %v276_v45 }
 0x156   :  { %v842_v52 = vadd.f32 %v841_v50, %v456_v48  ;;  %v843_v53 = vpop.f32.mrb[13].mxu0  ;;  %1105 = vmatmul.mubr.f32.gmra.mrb[118].mxu0 %v278_v46  ;;  %724 = vmatprep.mubr.f32.mxu1 %v281_v47 }
 0x157   :  { %1109 = vmatprep.mubr.f32.mxu0 %v283_v49 }
 0x158   :  { %1136 = vst [vmem:[#allocation7 + $0x30] sm:$0xff] %v842_v52  ;;  %v461_v57 = vpop.f32.mrb[14].mxu1 }
 0x159   :  { %v846_v59 = vpop.f32.mrb[14].mxu0  ;;  %v463_v60 = vpop.f32.mrb[15].mxu1  ;;  %725 = vmatmul.mubr.f32.gmra.mrb[120].mxu1 %v280_v54 }
 0x15a   :  { %v847_v61 = vadd.f32 %v846_v59, %v461_v57  ;;  %v848_v62 = vpop.f32.mrb[15].mxu0  ;;  %1110 = vmatmul.mubr.f32.gmra.mrb[120].mxu0 %v282_v55  ;;  %729 = vmatprep.mubr.f32.mxu1 %v285_v56 }
 0x15b   :  { %1114 = vmatprep.mubr.f32.mxu0 %v287_v58 }
 0x15c   :  { %1137 = vst [vmem:[#allocation7 + $0x38] sm:$0xff] %v847_v61  ;;  %v466_v3 = vpop.f32.mrb[16].mxu1 }
 0x15d   :  { %v851_v5 = vpop.f32.mrb[16].mxu0  ;;  %v468_v6 = vpop.f32.mrb[17].mxu1  ;;  %730 = vmatmul.mubr.f32.gmra.mrb[122].mxu1 %v284_v63 }
 0x15e   :  { %v852_v7 = vadd.f32 %v851_v5, %v466_v3  ;;  %v853_v8 = vpop.f32.mrb[17].mxu0  ;;  %1115 = vmatmul.mubr.f32.gmra.mrb[122].mxu0 %v286_v1  ;;  %734 = vmatprep.mubr.f32.mxu1 %v289_v2 }
 0x15f   :  { %1119 = vmatprep.mubr.f32.mxu0 %v291_v4 }
 0x160   :  { %1138 = vst [vmem:[#allocation7 + $0x40] sm:$0xff] %v852_v7  ;;  %v471_v12 = vpop.f32.mrb[18].mxu1 }
 0x161   :  { %v856_v14 = vpop.f32.mrb[18].mxu0  ;;  %v473_v15 = vpop.f32.mrb[19].mxu1  ;;  %735 = vmatmul.mubr.f32.gmra.mrb[124].mxu1 %v288_v9 }
 0x162   :  { %v857_v16 = vadd.f32 %v856_v14, %v471_v12  ;;  %v858_v17 = vpop.f32.mrb[19].mxu0  ;;  %1120 = vmatmul.mubr.f32.gmra.mrb[124].mxu0 %v290_v10  ;;  %739 = vmatprep.mubr.f32.mxu1 %v293_v11 }
 0x163   :  { %1124 = vmatprep.mubr.f32.mxu0 %v295_v13 }
 0x164   :  { %1139 = vst [vmem:[#allocation7 + $0x48] sm:$0xff] %v857_v16  ;;  %v476_v20 = vpop.f32.mrb[20].mxu1 }
 0x165   :  { %v861_v21 = vpop.f32.mrb[20].mxu0  ;;  %v478_v22 = vpop.f32.mrb[21].mxu1  ;;  %740 = vmatmul.mubr.f32.gmra.mrb[126].mxu1 %v292_v18 }
 0x166   :  { %v862_v23 = vadd.f32 %v861_v21, %v476_v20  ;;  %v863_v24 = vpop.f32.mrb[21].mxu0  ;;  %1125 = vmatmul.mubr.f32.gmra.mrb[126].mxu0 %v294_v19 }
 0x168   :  { %1140 = vst [vmem:[#allocation7 + $0x50] sm:$0xff] %v862_v23  ;;  %v481_v25 = vpop.f32.mrb[22].mxu1 }
 0x169   :  { %v866_v26 = vpop.f32.mrb[22].mxu0  ;;  %v483_v27 = vpop.f32.mrb[23].mxu1 }
 0x16a   :  { %v867_v28 = vadd.f32 %v866_v26, %v481_v25  ;;  %v868_v29 = vpop.f32.mrb[23].mxu0 }
 0x16c   :  { %1141 = vst [vmem:[#allocation7 + $0x58] sm:$0xff] %v867_v28  ;;  %v486_v30 = vpop.f32.mrb[24].mxu1 }
 0x16d   :  { %v871_v31 = vpop.f32.mrb[24].mxu0  ;;  %v488_v32 = vpop.f32.mrb[25].mxu1 }
 0x16e   :  { %v872_v33 = vadd.f32 %v871_v31, %v486_v30  ;;  %v873_v34 = vpop.f32.mrb[25].mxu0 }
 0x170   :  { %1142 = vst [vmem:[#allocation7 + $0x60] sm:$0xff] %v872_v33  ;;  %v491_v35 = vpop.f32.mrb[26].mxu1 }
 0x171   :  { %v876_v36 = vpop.f32.mrb[26].mxu0  ;;  %v493_v37 = vpop.f32.mrb[27].mxu1 }
 0x172   :  { %v877_v38 = vadd.f32 %v876_v36, %v491_v35  ;;  %v878_v39 = vpop.f32.mrb[27].mxu0 }
 0x174   :  { %1143 = vst [vmem:[#allocation7 + $0x68] sm:$0xff] %v877_v38  ;;  %v496_v40 = vpop.f32.mrb[28].mxu1 }
 0x175   :  { %v881_v41 = vpop.f32.mrb[28].mxu0  ;;  %v498_v42 = vpop.f32.mrb[29].mxu1 }
 0x176   :  { %v882_v43 = vadd.f32 %v881_v41, %v496_v40  ;;  %v883_v44 = vpop.f32.mrb[29].mxu0 }
 0x178   :  { %1144 = vst [vmem:[#allocation7 + $0x70] sm:$0xff] %v882_v43  ;;  %v501_v0 = vpop.f32.mrb[30].mxu1 }
 0x179   :  { %v886_v45 = vpop.f32.mrb[30].mxu0  ;;  %v503_v46 = vpop.f32.mrb[31].mxu1 }
 0x17a   :  { %v887_v47 = vadd.f32 %v886_v45, %v501_v0  ;;  %v888_v48 = vpop.f32.mrb[31].mxu0 }
 0x17c   :  { %1145 = vst [vmem:[#allocation7 + $0x78] sm:$0xff] %v887_v47  ;;  %v506_v49 = vpop.f32.mrb[32].mxu1 }
 0x17d   :  { %v891_v50 = vpop.f32.mrb[32].mxu0  ;;  %v508_v51 = vpop.f32.mrb[33].mxu1 }
 0x17e   :  { %v892_v52 = vadd.f32 %v891_v50, %v506_v49  ;;  %v893_v53 = vpop.f32.mrb[33].mxu0 }
 0x180   :  { %1146 = vst [vmem:[#allocation7 + $0x80] sm:$0xff] %v892_v52  ;;  %v511_v54 = vpop.f32.mrb[34].mxu1 }
 0x181   :  { %v896_v55 = vpop.f32.mrb[34].mxu0  ;;  %v513_v56 = vpop.f32.mrb[35].mxu1 }
 0x182   :  { %v897_v57 = vadd.f32 %v896_v55, %v511_v54  ;;  %v898_v58 = vpop.f32.mrb[35].mxu0 }
 0x184   :  { %1147 = vst [vmem:[#allocation7 + $0x88] sm:$0xff] %v897_v57  ;;  %v516_v59 = vpop.f32.mrb[36].mxu1 }
 0x185   :  { %v901_v60 = vpop.f32.mrb[36].mxu0  ;;  %v518_v61 = vpop.f32.mrb[37].mxu1 }
 0x186   :  { %v902_v62 = vadd.f32 %v901_v60, %v516_v59  ;;  %v903_v63 = vpop.f32.mrb[37].mxu0 }
 0x188   :  { %1148 = vst [vmem:[#allocation7 + $0x90] sm:$0xff] %v902_v62  ;;  %v521_v1 = vpop.f32.mrb[38].mxu1 }
 0x189   :  { %v906_v2 = vpop.f32.mrb[38].mxu0  ;;  %v523_v3 = vpop.f32.mrb[39].mxu1 }
 0x18a   :  { %v907_v4 = vadd.f32 %v906_v2, %v521_v1  ;;  %v908_v5 = vpop.f32.mrb[39].mxu0 }
 0x18c   :  { %1149 = vst [vmem:[#allocation7 + $0x98] sm:$0xff] %v907_v4  ;;  %v526_v6 = vpop.f32.mrb[40].mxu1 }
 0x18d   :  { %v911_v7 = vpop.f32.mrb[40].mxu0  ;;  %v528_v8 = vpop.f32.mrb[41].mxu1 }
 0x18e   :  { %v912_v9 = vadd.f32 %v911_v7, %v526_v6  ;;  %v913_v10 = vpop.f32.mrb[41].mxu0 }
 0x190   :  { %1150 = vst [vmem:[#allocation7 + $0xa0] sm:$0xff] %v912_v9  ;;  %v531_v11 = vpop.f32.mrb[42].mxu1 }
 0x191   :  { %v916_v12 = vpop.f32.mrb[42].mxu0  ;;  %v533_v13 = vpop.f32.mrb[43].mxu1 }
 0x192   :  { %v917_v14 = vadd.f32 %v916_v12, %v531_v11  ;;  %v918_v15 = vpop.f32.mrb[43].mxu0 }
 0x194   :  { %1151 = vst [vmem:[#allocation7 + $0xa8] sm:$0xff] %v917_v14  ;;  %v536_v16 = vpop.f32.mrb[44].mxu1 }
 0x195   :  { %v921_v17 = vpop.f32.mrb[44].mxu0  ;;  %v538_v18 = vpop.f32.mrb[45].mxu1 }
 0x196   :  { %v922_v19 = vadd.f32 %v921_v17, %v536_v16  ;;  %v923_v20 = vpop.f32.mrb[45].mxu0 }
 0x198   :  { %1152 = vst [vmem:[#allocation7 + $0xb0] sm:$0xff] %v922_v19  ;;  %v541_v21 = vpop.f32.mrb[46].mxu1 }
 0x199   :  { %v926_v22 = vpop.f32.mrb[46].mxu0  ;;  %v543_v23 = vpop.f32.mrb[47].mxu1 }
 0x19a   :  { %v927_v24 = vadd.f32 %v926_v22, %v541_v21  ;;  %v928_v25 = vpop.f32.mrb[47].mxu0 }
 0x19c   :  { %1153 = vst [vmem:[#allocation7 + $0xb8] sm:$0xff] %v927_v24  ;;  %v546_v26 = vpop.f32.mrb[48].mxu1 }
 0x19d   :  { %v931_v27 = vpop.f32.mrb[48].mxu0  ;;  %v548_v28 = vpop.f32.mrb[49].mxu1 }
 0x19e   :  { %v932_v29 = vadd.f32 %v931_v27, %v546_v26  ;;  %v933_v30 = vpop.f32.mrb[49].mxu0 }
 0x1a0   :  { %1154 = vst [vmem:[#allocation7 + $0xc0] sm:$0xff] %v932_v29  ;;  %v551_v31 = vpop.f32.mrb[50].mxu1 }
 0x1a1   :  { %v936_v32 = vpop.f32.mrb[50].mxu0  ;;  %v553_v33 = vpop.f32.mrb[51].mxu1 }
 0x1a2   :  { %v937_v34 = vadd.f32 %v936_v32, %v551_v31  ;;  %v938_v35 = vpop.f32.mrb[51].mxu0 }
 0x1a4   :  { %1155 = vst [vmem:[#allocation7 + $0xc8] sm:$0xff] %v937_v34  ;;  %v556_v36 = vpop.f32.mrb[52].mxu1 }
 0x1a5   :  { %v941_v37 = vpop.f32.mrb[52].mxu0  ;;  %v558_v38 = vpop.f32.mrb[53].mxu1 }
 0x1a6   :  { %v942_v39 = vadd.f32 %v941_v37, %v556_v36  ;;  %v943_v40 = vpop.f32.mrb[53].mxu0 }
 0x1a8   :  { %1156 = vst [vmem:[#allocation7 + $0xd0] sm:$0xff] %v942_v39  ;;  %v561_v41 = vpop.f32.mrb[54].mxu1 }
 0x1a9   :  { %v946_v42 = vpop.f32.mrb[54].mxu0  ;;  %v563_v43 = vpop.f32.mrb[55].mxu1 }
 0x1aa   :  { %v947_v44 = vadd.f32 %v946_v42, %v561_v41  ;;  %v948_v0 = vpop.f32.mrb[55].mxu0 }
 0x1ac   :  { %1157 = vst [vmem:[#allocation7 + $0xd8] sm:$0xff] %v947_v44  ;;  %v566_v45 = vpop.f32.mrb[56].mxu1 }
 0x1ad   :  { %v951_v46 = vpop.f32.mrb[56].mxu0  ;;  %v568_v47 = vpop.f32.mrb[57].mxu1 }
 0x1ae   :  { %v952_v48 = vadd.f32 %v951_v46, %v566_v45  ;;  %v953_v49 = vpop.f32.mrb[57].mxu0 }
 0x1b0   :  { %1158 = vst [vmem:[#allocation7 + $0xe0] sm:$0xff] %v952_v48  ;;  %v571_v50 = vpop.f32.mrb[58].mxu1 }
 0x1b1   :  { %v956_v51 = vpop.f32.mrb[58].mxu0  ;;  %v573_v52 = vpop.f32.mrb[59].mxu1 }
 0x1b2   :  { %v957_v53 = vadd.f32 %v956_v51, %v571_v50  ;;  %v958_v54 = vpop.f32.mrb[59].mxu0 }
 0x1b4   :  { %1159 = vst [vmem:[#allocation7 + $0xe8] sm:$0xff] %v957_v53  ;;  %v576_v55 = vpop.f32.mrb[60].mxu1 }
 0x1b5   :  { %v961_v56 = vpop.f32.mrb[60].mxu0  ;;  %v578_v57 = vpop.f32.mrb[61].mxu1 }
 0x1b6   :  { %v962_v58 = vadd.f32 %v961_v56, %v576_v55  ;;  %v963_v59 = vpop.f32.mrb[61].mxu0 }
 0x1b8   :  { %1160 = vst [vmem:[#allocation7 + $0xf0] sm:$0xff] %v962_v58  ;;  %v581_v60 = vpop.f32.mrb[62].mxu1 }
 0x1b9   :  { %v966_v61 = vpop.f32.mrb[62].mxu0  ;;  %v583_v62 = vpop.f32.mrb[63].mxu1 }
 0x1ba   :  { %v967_v63 = vadd.f32 %v966_v61, %v581_v60  ;;  %v968_v1 = vpop.f32.mrb[63].mxu0 }
 0x1bc   :  { %1161 = vst [vmem:[#allocation7 + $0xf8] sm:$0xff] %v967_v63  ;;  %v586_v2 = vpop.f32.mrb[64].mxu1 }
 0x1bd   :  { %v971_v3 = vpop.f32.mrb[64].mxu0  ;;  %v588_v4 = vpop.f32.mrb[65].mxu1 }
 0x1be   :  { %v972_v5 = vadd.f32 %v971_v3, %v586_v2  ;;  %v973_v6 = vpop.f32.mrb[65].mxu0 }
 0x1c0   :  { %1162 = vst [vmem:[#allocation7 + $0x100] sm:$0xff] %v972_v5  ;;  %v591_v7 = vpop.f32.mrb[66].mxu1 }
 0x1c1   :  { %v976_v8 = vpop.f32.mrb[66].mxu0  ;;  %v593_v9 = vpop.f32.mrb[67].mxu1 }
 0x1c2   :  { %v977_v10 = vadd.f32 %v976_v8, %v591_v7  ;;  %v978_v11 = vpop.f32.mrb[67].mxu0 }
 0x1c4   :  { %1163 = vst [vmem:[#allocation7 + $0x108] sm:$0xff] %v977_v10  ;;  %v596_v12 = vpop.f32.mrb[68].mxu1 }
 0x1c5   :  { %v981_v13 = vpop.f32.mrb[68].mxu0  ;;  %v598_v14 = vpop.f32.mrb[69].mxu1 }
 0x1c6   :  { %v982_v15 = vadd.f32 %v981_v13, %v596_v12  ;;  %v983_v16 = vpop.f32.mrb[69].mxu0 }
 0x1c8   :  { %1164 = vst [vmem:[#allocation7 + $0x110] sm:$0xff] %v982_v15  ;;  %v601_v17 = vpop.f32.mrb[70].mxu1 }
 0x1c9   :  { %v986_v18 = vpop.f32.mrb[70].mxu0  ;;  %v603_v19 = vpop.f32.mrb[71].mxu1 }
 0x1ca   :  { %v987_v20 = vadd.f32 %v986_v18, %v601_v17  ;;  %v988_v21 = vpop.f32.mrb[71].mxu0 }
 0x1cc   :  { %1165 = vst [vmem:[#allocation7 + $0x118] sm:$0xff] %v987_v20  ;;  %v606_v22 = vpop.f32.mrb[72].mxu1 }
 0x1cd   :  { %v991_v23 = vpop.f32.mrb[72].mxu0  ;;  %v608_v24 = vpop.f32.mrb[73].mxu1 }
 0x1ce   :  { %v992_v25 = vadd.f32 %v991_v23, %v606_v22  ;;  %v993_v26 = vpop.f32.mrb[73].mxu0 }
 0x1d0   :  { %1166 = vst [vmem:[#allocation7 + $0x120] sm:$0xff] %v992_v25  ;;  %v611_v27 = vpop.f32.mrb[74].mxu1 }
 0x1d1   :  { %v996_v28 = vpop.f32.mrb[74].mxu0  ;;  %v613_v29 = vpop.f32.mrb[75].mxu1 }
 0x1d2   :  { %v997_v30 = vadd.f32 %v996_v28, %v611_v27  ;;  %v998_v31 = vpop.f32.mrb[75].mxu0 }
 0x1d4   :  { %1167 = vst [vmem:[#allocation7 + $0x128] sm:$0xff] %v997_v30  ;;  %v616_v32 = vpop.f32.mrb[76].mxu1 }
 0x1d5   :  { %v1001_v33 = vpop.f32.mrb[76].mxu0  ;;  %v618_v34 = vpop.f32.mrb[77].mxu1 }
 0x1d6   :  { %v1002_v35 = vadd.f32 %v1001_v33, %v616_v32  ;;  %v1003_v36 = vpop.f32.mrb[77].mxu0 }
 0x1d8   :  { %1168 = vst [vmem:[#allocation7 + $0x130] sm:$0xff] %v1002_v35  ;;  %v621_v37 = vpop.f32.mrb[78].mxu1 }
 0x1d9   :  { %v1006_v38 = vpop.f32.mrb[78].mxu0  ;;  %v623_v39 = vpop.f32.mrb[79].mxu1 }
 0x1da   :  { %v1007_v40 = vadd.f32 %v1006_v38, %v621_v37  ;;  %v1008_v41 = vpop.f32.mrb[79].mxu0 }
 0x1dc   :  { %1169 = vst [vmem:[#allocation7 + $0x138] sm:$0xff] %v1007_v40  ;;  %v626_v42 = vpop.f32.mrb[80].mxu1 }
 0x1dd   :  { %v1011_v43 = vpop.f32.mrb[80].mxu0  ;;  %v628_v44 = vpop.f32.mrb[81].mxu1 }
 0x1de   :  { %v1012_v0 = vadd.f32 %v1011_v43, %v626_v42  ;;  %v1013_v45 = vpop.f32.mrb[81].mxu0 }
 0x1e0   :  { %1170 = vst [vmem:[#allocation7 + $0x140] sm:$0xff] %v1012_v0  ;;  %v631_v46 = vpop.f32.mrb[82].mxu1 }
 0x1e1   :  { %v1016_v47 = vpop.f32.mrb[82].mxu0  ;;  %v633_v48 = vpop.f32.mrb[83].mxu1 }
 0x1e2   :  { %v1017_v49 = vadd.f32 %v1016_v47, %v631_v46  ;;  %v1018_v50 = vpop.f32.mrb[83].mxu0 }
 0x1e4   :  { %1171 = vst [vmem:[#allocation7 + $0x148] sm:$0xff] %v1017_v49  ;;  %v636_v51 = vpop.f32.mrb[84].mxu1 }
 0x1e5   :  { %v1021_v52 = vpop.f32.mrb[84].mxu0  ;;  %v638_v53 = vpop.f32.mrb[85].mxu1 }
 0x1e6   :  { %v1022_v54 = vadd.f32 %v1021_v52, %v636_v51  ;;  %v1023_v55 = vpop.f32.mrb[85].mxu0 }
 0x1e8   :  { %1172 = vst [vmem:[#allocation7 + $0x150] sm:$0xff] %v1022_v54  ;;  %v641_v56 = vpop.f32.mrb[86].mxu1 }
 0x1e9   :  { %v1026_v57 = vpop.f32.mrb[86].mxu0  ;;  %v643_v58 = vpop.f32.mrb[87].mxu1 }
 0x1ea   :  { %v1027_v59 = vadd.f32 %v1026_v57, %v641_v56  ;;  %v1028_v60 = vpop.f32.mrb[87].mxu0 }
 0x1ec   :  { %1173 = vst [vmem:[#allocation7 + $0x158] sm:$0xff] %v1027_v59  ;;  %v646_v61 = vpop.f32.mrb[88].mxu1 }
 0x1ed   :  { %v1031_v62 = vpop.f32.mrb[88].mxu0  ;;  %v648_v63 = vpop.f32.mrb[89].mxu1 }
 0x1ee   :  { %v1032_v1 = vadd.f32 %v1031_v62, %v646_v61  ;;  %v1033_v2 = vpop.f32.mrb[89].mxu0 }
 0x1f0   :  { %1174 = vst [vmem:[#allocation7 + $0x160] sm:$0xff] %v1032_v1  ;;  %v651_v3 = vpop.f32.mrb[90].mxu1 }
 0x1f1   :  { %v1036_v4 = vpop.f32.mrb[90].mxu0  ;;  %v653_v5 = vpop.f32.mrb[91].mxu1 }
 0x1f2   :  { %v1037_v6 = vadd.f32 %v1036_v4, %v651_v3  ;;  %v1038_v7 = vpop.f32.mrb[91].mxu0 }
 0x1f4   :  { %1175 = vst [vmem:[#allocation7 + $0x168] sm:$0xff] %v1037_v6  ;;  %v656_v8 = vpop.f32.mrb[92].mxu1 }
 0x1f5   :  { %v1041_v9 = vpop.f32.mrb[92].mxu0  ;;  %v658_v10 = vpop.f32.mrb[93].mxu1 }
 0x1f6   :  { %v1042_v11 = vadd.f32 %v1041_v9, %v656_v8  ;;  %v1043_v12 = vpop.f32.mrb[93].mxu0 }
 0x1f8   :  { %1176 = vst [vmem:[#allocation7 + $0x170] sm:$0xff] %v1042_v11  ;;  %v661_v13 = vpop.f32.mrb[94].mxu1 }
 0x1f9   :  { %v1046_v14 = vpop.f32.mrb[94].mxu0  ;;  %v663_v15 = vpop.f32.mrb[95].mxu1 }
 0x1fa   :  { %v1047_v16 = vadd.f32 %v1046_v14, %v661_v13  ;;  %v1048_v17 = vpop.f32.mrb[95].mxu0 }
 0x1fc   :  { %1177 = vst [vmem:[#allocation7 + $0x178] sm:$0xff] %v1047_v16  ;;  %v666_v18 = vpop.f32.mrb[96].mxu1 }
 0x1fd   :  { %v1051_v19 = vpop.f32.mrb[96].mxu0  ;;  %v668_v20 = vpop.f32.mrb[97].mxu1 }
 0x1fe   :  { %v1052_v21 = vadd.f32 %v1051_v19, %v666_v18  ;;  %v1053_v22 = vpop.f32.mrb[97].mxu0 }
 0x200   :  { %1178 = vst [vmem:[#allocation7 + $0x180] sm:$0xff] %v1052_v21  ;;  %v671_v23 = vpop.f32.mrb[98].mxu1 }
 0x201   :  { %v1056_v24 = vpop.f32.mrb[98].mxu0  ;;  %v673_v25 = vpop.f32.mrb[99].mxu1 }
 0x202   :  { %v1057_v26 = vadd.f32 %v1056_v24, %v671_v23  ;;  %v1058_v27 = vpop.f32.mrb[99].mxu0 }
 0x204   :  { %1179 = vst [vmem:[#allocation7 + $0x188] sm:$0xff] %v1057_v26  ;;  %v676_v28 = vpop.f32.mrb[100].mxu1 }
 0x205   :  { %v1061_v29 = vpop.f32.mrb[100].mxu0  ;;  %v678_v30 = vpop.f32.mrb[101].mxu1 }
 0x206   :  { %v1062_v31 = vadd.f32 %v1061_v29, %v676_v28  ;;  %v1063_v32 = vpop.f32.mrb[101].mxu0 }
 0x208   :  { %1180 = vst [vmem:[#allocation7 + $0x190] sm:$0xff] %v1062_v31  ;;  %v681_v33 = vpop.f32.mrb[102].mxu1 }
 0x209   :  { %v1066_v34 = vpop.f32.mrb[102].mxu0  ;;  %v683_v35 = vpop.f32.mrb[103].mxu1 }
 0x20a   :  { %v1067_v36 = vadd.f32 %v1066_v34, %v681_v33  ;;  %v1068_v37 = vpop.f32.mrb[103].mxu0 }
 0x20c   :  { %1181 = vst [vmem:[#allocation7 + $0x198] sm:$0xff] %v1067_v36  ;;  %v686_v38 = vpop.f32.mrb[104].mxu1 }
 0x20d   :  { %v1071_v39 = vpop.f32.mrb[104].mxu0  ;;  %v688_v40 = vpop.f32.mrb[105].mxu1 }
 0x20e   :  { %v1072_v41 = vadd.f32 %v1071_v39, %v686_v38  ;;  %v1073_v42 = vpop.f32.mrb[105].mxu0 }
 0x210   :  { %1182 = vst [vmem:[#allocation7 + $0x1a0] sm:$0xff] %v1072_v41  ;;  %v691_v43 = vpop.f32.mrb[106].mxu1 }
 0x211   :  { %v1076_v44 = vpop.f32.mrb[106].mxu0  ;;  %v693_v0 = vpop.f32.mrb[107].mxu1 }
 0x212   :  { %v1077_v45 = vadd.f32 %v1076_v44, %v691_v43  ;;  %v1078_v46 = vpop.f32.mrb[107].mxu0 }
 0x214   :  { %1183 = vst [vmem:[#allocation7 + $0x1a8] sm:$0xff] %v1077_v45  ;;  %v696_v47 = vpop.f32.mrb[108].mxu1 }
 0x215   :  { %v1081_v48 = vpop.f32.mrb[108].mxu0  ;;  %v698_v49 = vpop.f32.mrb[109].mxu1 }
 0x216   :  { %v1082_v50 = vadd.f32 %v1081_v48, %v696_v47  ;;  %v1083_v51 = vpop.f32.mrb[109].mxu0 }
 0x218   :  { %1184 = vst [vmem:[#allocation7 + $0x1b0] sm:$0xff] %v1082_v50  ;;  %v701_v52 = vpop.f32.mrb[110].mxu1 }
 0x219   :  { %v1086_v53 = vpop.f32.mrb[110].mxu0  ;;  %v703_v54 = vpop.f32.mrb[111].mxu1 }
 0x21a   :  { %v1087_v55 = vadd.f32 %v1086_v53, %v701_v52  ;;  %v1088_v56 = vpop.f32.mrb[111].mxu0 }
 0x21c   :  { %1185 = vst [vmem:[#allocation7 + $0x1b8] sm:$0xff] %v1087_v55  ;;  %v706_v57 = vpop.f32.mrb[112].mxu1 }
 0x21d   :  { %v1091_v58 = vpop.f32.mrb[112].mxu0  ;;  %v708_v59 = vpop.f32.mrb[113].mxu1 }
 0x21e   :  { %v1092_v60 = vadd.f32 %v1091_v58, %v706_v57  ;;  %v1093_v61 = vpop.f32.mrb[113].mxu0 }
 0x220   :  { %1186 = vst [vmem:[#allocation7 + $0x1c0] sm:$0xff] %v1092_v60  ;;  %v711_v62 = vpop.f32.mrb[114].mxu1 }
 0x221   :  { %v1096_v63 = vpop.f32.mrb[114].mxu0  ;;  %v713_v1 = vpop.f32.mrb[115].mxu1 }
 0x222   :  { %v1097_v2 = vadd.f32 %v1096_v63, %v711_v62  ;;  %v1098_v3 = vpop.f32.mrb[115].mxu0 }
 0x224   :  { %1187 = vst [vmem:[#allocation7 + $0x1c8] sm:$0xff] %v1097_v2  ;;  %v716_v4 = vpop.f32.mrb[116].mxu1 }
 0x225   :  { %v1101_v5 = vpop.f32.mrb[116].mxu0  ;;  %v718_v6 = vpop.f32.mrb[117].mxu1 }
 0x226   :  { %v1102_v7 = vadd.f32 %v1101_v5, %v716_v4  ;;  %v1103_v8 = vpop.f32.mrb[117].mxu0 }
 0x228   :  { %1188 = vst [vmem:[#allocation7 + $0x1d0] sm:$0xff] %v1102_v7  ;;  %v721_v9 = vpop.f32.mrb[118].mxu1 }
 0x229   :  { %v1106_v10 = vpop.f32.mrb[118].mxu0  ;;  %v723_v11 = vpop.f32.mrb[119].mxu1 }
 0x22a   :  { %v1107_v12 = vadd.f32 %v1106_v10, %v721_v9  ;;  %v1108_v13 = vpop.f32.mrb[119].mxu0 }
 0x22c   :  { %1189 = vst [vmem:[#allocation7 + $0x1d8] sm:$0xff] %v1107_v12  ;;  %v726_v14 = vpop.f32.mrb[120].mxu1 }
 0x22d   :  { %v1111_v15 = vpop.f32.mrb[120].mxu0  ;;  %v728_v16 = vpop.f32.mrb[121].mxu1 }
 0x22e   :  { %v1112_v17 = vadd.f32 %v1111_v15, %v726_v14  ;;  %v1113_v18 = vpop.f32.mrb[121].mxu0 }
 0x230   :  { %1190 = vst [vmem:[#allocation7 + $0x1e0] sm:$0xff] %v1112_v17  ;;  %v731_v19 = vpop.f32.mrb[122].mxu1 }
 0x231   :  { %v1116_v20 = vpop.f32.mrb[122].mxu0  ;;  %v733_v21 = vpop.f32.mrb[123].mxu1 }
 0x232   :  { %v1117_v22 = vadd.f32 %v1116_v20, %v731_v19  ;;  %v1118_v23 = vpop.f32.mrb[123].mxu0 }
 0x234   :  { %1191 = vst [vmem:[#allocation7 + $0x1e8] sm:$0xff] %v1117_v22  ;;  %v736_v24 = vpop.f32.mrb[124].mxu1 }
 0x235   :  { %v1121_v25 = vpop.f32.mrb[124].mxu0  ;;  %v738_v26 = vpop.f32.mrb[125].mxu1 }
 0x236   :  { %v1122_v27 = vadd.f32 %v1121_v25, %v736_v24  ;;  %v1123_v28 = vpop.f32.mrb[125].mxu0 }
 0x238   :  { %1192 = vst [vmem:[#allocation7 + $0x1f0] sm:$0xff] %v1122_v27  ;;  %v741_v29 = vpop.f32.mrb[126].mxu1 }
 0x239   :  { %v1126_v30 = vpop.f32.mrb[126].mxu0  ;;  %v743_v31 = vpop.f32.mrb[127].mxu1 }
 0x23a   :  { %v1127_v32 = vadd.f32 %v1126_v30, %v741_v29  ;;  %v1128_v33 = vpop.f32.mrb[127].mxu0 }
 0x23c   :  { %1193 = vst [vmem:[#allocation7 + $0x1f8] sm:$0xff] %v1127_v32 }
 0x23d   :  { %1435 = shalt.err (!%p1432_p6)
}
 0x23e   :  { %s1436_s12 = scalar_lea.hbm %s1551_s2, 8192 }
 0x23f   :  { %p1437_p7 = scmp.ne.s32.totalorder %s1551_s2, %s1436_s12  ;;  %p1440_p8 = scmp.lt.u32.totalorder %s1436_s12, %s1551_s2 }
 0x241   :  { %p1442_p9 = pnand %p1440_p8, %p1437_p7 }
 0x243   :  { %1445 = shalt.err (!%p1442_p9)
}
 0x244   :  { %1205 = dma.vmem_to_hbm [thread:$0]  %s1200_s8, 8192, %s1551_s2, [#allocation4], %s1456_s0, %s1456_s0, %s1457_s5  }
 0x245   :  { %1450 = dma.done.wait [#allocation4], 8192  }
 0x246   :  { %1451 = vsyncadd [#allocation4], 4294959104 }
 0x247   :  { %1209 = vsyncpa [#allocation3], 1 }
 0x248   :  { %1210 = vsyncpa [#allocation6], 1 }
 0x249   :  { %1211 = vsyncpa [#allocation4], 1 }

</bundles_post_ra>
